<compile_context>
chip_gen: v5e
topology: v5e:2x2
jax: 0.10.0
libtpu: 0.0.40
codegen_flags: <defaults>
</compile_context>

<pallas_src>
import functools
import math

import jax
import jax.numpy as jnp
from jax.experimental import pallas as pl
from jax.experimental.pallas import tpu as pltpu


# ---------------------------------------------------------------------------
# Helpers
# ---------------------------------------------------------------------------
def _round_up(x, m):
    return -(-x // m) * m


def _detect_multi_tc():
    """True only for chips with >1 TensorCore per device (megacore / v7x)."""
    try:
        kind = jax.devices()[0].device_kind.lower()
    except Exception:  # pragma: no cover
        return False
    return any(tag in kind for tag in ("v3", "v4", "v5p", "v7"))


_MULTI_TC = _detect_multi_tc()


def _row_tile(m, max_tile=512):
    """Largest 8-multiple row tile <= max_tile.  Only on multi-TC chips do we
    force >=2 grid steps (so both TensorCores get work); on single-TC v5e/v6e
    a bigger single tile wins (each extra grid step is ~0.35 us of overhead)."""
    mp8 = _round_up(m, 8)
    tm = min(mp8, max_tile)
    if _MULTI_TC and mp8 > 8 and pl.cdiv(m, tm) < 2:
        tm = max(8, _round_up(-(-mp8 // 2), 8))
    return tm


def _compiler_params(vmem_bytes=None):
    kw = dict(dimension_semantics=("parallel",))
    # Only raise the scoped-VMEM limit when the estimated working set exceeds
    # the smallest default (v5e ~16 MiB); cap at 48 MiB so we stay inside
    # v7x's 64 MiB physical VMEM with headroom.
    if vmem_bytes is not None and vmem_bytes > 12 * (1 << 20):
        kw["vmem_limit_bytes"] = int(min(vmem_bytes + 4 * (1 << 20), 48 * (1 << 20)))
    return pltpu.CompilerParams(**kw)


def _pad_cols(x, to):
    pad = to - x.shape[-1]
    return x if pad == 0 else jnp.pad(x, ((0, 0), (0, pad)))


def _pad2(w, rows, cols):
    return jnp.pad(w, ((0, rows - w.shape[0]), (0, cols - w.shape[1])))


def _pad1(b, n):
    return jnp.pad(b, (0, n - b.shape[0]))


# ---------------------------------------------------------------------------
# Pallas kernels
# ---------------------------------------------------------------------------
def _matmul_bias_kernel(x_ref, w_ref, b_ref, o_ref):
    """o = x @ w + b ; MXU in bf16, f32 accumulation.  Lane-dense output."""
    x = x_ref[...].astype(jnp.bfloat16)
    w = w_ref[...].astype(jnp.bfloat16)
    y = jnp.dot(x, w, preferred_element_type=jnp.float32) + b_ref[...]
    o_ref[...] = y.astype(o_ref.dtype)


def _resln_ffn_resln_kernel(x_ref, d_ref, g0_ref, b0_ref, w1_ref, b1_ref,
                            w2_ref, b2_ref, g1_ref, be1_ref, o_ref, *, real_h):
    """Fully fused post-attention block:
         t   = LayerNorm0(x + d)
         o   = LayerNorm1(t + W2(relu(W1 t)))
       The [tm, 4H] intermediate and the LN0 output never leave VMEM/vregs.
       Pad lanes (>= real_h) are kept exactly zero (zero-padded weights,
       gamma/beta zero in pad lanes); LN statistics use the real H only."""
    hp = x_ref.shape[-1]
    lane = jax.lax.broadcasted_iota(jnp.int32, (1, hp), 1)
    mask = (lane < real_h).astype(jnp.float32)
    inv_h = 1.0 / float(real_h)

    def layer_norm(t, g, b):
        mu = jnp.sum(t, axis=-1, keepdims=True) * inv_h          # pad lanes are 0
        var = jnp.sum(jnp.square(t - mu) * mask, axis=-1, keepdims=True) * inv_h
        return (t - mu) * jax.lax.rsqrt(var + 1e-5) * g + b      # g/b zero pad lanes

    t = layer_norm(x_ref[...] + d_ref[...], g0_ref[...], b0_ref[...])
    h = jnp.dot(t.astype(jnp.bfloat16), w1_ref[...].astype(jnp.bfloat16),
                preferred_element_type=jnp.float32) + b1_ref[...]
    h = jnp.maximum(h, 0.0)
    y = jnp.dot(h.astype(jnp.bfloat16), w2_ref[...].astype(jnp.bfloat16),
                preferred_element_type=jnp.float32) + b2_ref[...]
    o_ref[...] = layer_norm(y + t, g1_ref[...], be1_ref[...]).astype(o_ref.dtype)


def _edge_mlp_bn_kernel(xs_ref, xe_ref, xd_ref, wa_ref, wb_ref, wc_ref,
                        b1_ref, w2_ref, b2_ref, sc_ref, sh_ref, o_ref):
    """Fused EdgeMLP (split-K, no [E,3H] concat) + residual + eval BatchNorm:
       o = (xe + W12(GELU(xs@Wa + xe@Wb + xd@Wc + b1)) + b2) * scale + shift"""
    bf = jnp.bfloat16
    xe = xe_ref[...]
    h = (jnp.dot(xs_ref[...].astype(bf), wa_ref[...].astype(bf),
                 preferred_element_type=jnp.float32)
         + jnp.dot(xe.astype(bf), wb_ref[...].astype(bf),
                   preferred_element_type=jnp.float32)
         + jnp.dot(xd_ref[...].astype(bf), wc_ref[...].astype(bf),
                   preferred_element_type=jnp.float32)
         + b1_ref[...])
    h = 0.5 * h * (1.0 + jax.lax.erf(h * (1.0 / math.sqrt(2.0))))   # exact GELU
    y = jnp.dot(h.astype(bf), w2_ref[...].astype(bf),
                preferred_element_type=jnp.float32) + b2_ref[...]
    o_ref[...] = ((xe + y) * sc_ref[...] + sh_ref[...]).astype(o_ref.dtype)


# ---------------------------------------------------------------------------
# Pallas wrappers (all arrays already in the padded, lane-dense layout)
# ---------------------------------------------------------------------------
def pallas_linear(x, w, b=None):
    """y = x @ w + b.  x:[M,Kp] f32, w:[Kp,Np] bf16 (Np % 128 == 0)."""
    m, k = x.shape
    n = w.shape[1]
    if b is None:
        b = jnp.zeros((n,), jnp.float32)
    tm = _row_tile(m)
    row = lambda i: (i, 0)
    full = lambda i: (0, 0)
    return pl.pallas_call(
        _matmul_bias_kernel,
        out_shape=jax.ShapeDtypeStruct((m, n), jnp.float32),
        grid=(pl.cdiv(m, tm),),
        in_specs=[
            pl.BlockSpec((tm, k), row),
            pl.BlockSpec((k, n), full),     # resident weight
            pl.BlockSpec((1, n), full),
        ],
        out_specs=pl.BlockSpec((tm, n), row),
        compiler_params=_compiler_params(),
        cost_estimate=pl.CostEstimate(
            flops=2 * m * k * n, transcendentals=0,
            bytes_accessed=(m * k + m * n) * 4 + k * n * 2),
    )(x, w, b.reshape(1, n))


def pallas_attn_ffn_block(x, d, g0, b0, w1, b1, w2, b2, g1, be1, *, real_h):
    """LN1(t + FFN(t)) with t = LN0(x + d); one fused kernel."""
    m, hp = x.shape
    f4p = w1.shape[1]
    tm = _row_tile(m)
    row = lambda i: (i, 0)
    full = lambda i: (0, 0)
    vmem_est = (hp * f4p * 2 * 2 * 2            # W1 + W2 bf16, double-buffered
                + 2 * tm * hp * 4 * 2           # x, d tiles (double-buffered)
                + tm * hp * 4 * 2               # output
                + tm * f4p * 4)                 # on-chip intermediate
    return pl.pallas_call(
        functools.partial(_resln_ffn_resln_kernel, real_h=real_h),
        out_shape=jax.ShapeDtypeStruct((m, hp), jnp.float32),
        grid=(pl.cdiv(m, tm),),
        in_specs=[
            pl.BlockSpec((tm, hp), row),
            pl.BlockSpec((tm, hp), row),
            pl.BlockSpec((1, hp), full),
            pl.BlockSpec((1, hp), full),
            pl.BlockSpec((hp, f4p), full),
            pl.BlockSpec((1, f4p), full),
            pl.BlockSpec((f4p, hp), full),
            pl.BlockSpec((1, hp), full),
            pl.BlockSpec((1, hp), full),
            pl.BlockSpec((1, hp), full),
        ],
        out_specs=pl.BlockSpec((tm, hp), row),
        compiler_params=_compiler_params(vmem_est),
        cost_estimate=pl.CostEstimate(
            flops=4 * m * hp * f4p, transcendentals=2 * m,
            bytes_accessed=3 * m * hp * 4 + 2 * hp * f4p * 2),
    )(x, d, g0.reshape(1, hp), b0.reshape(1, hp), w1, b1.reshape(1, f4p),
      w2, b2.reshape(1, hp), g1.reshape(1, hp), be1.reshape(1, hp))


def pallas_edge_mlp_bn(x_src, x_e, x_dst, wa, wb, wc, b1, w2, b2, scale, shift):
    e, hp = x_e.shape
    tm = _row_tile(e)
    row = lambda i: (i, 0)
    full = lambda i: (0, 0)
    vmem_est = (4 * hp * hp * 2 * 2             # Wa/Wb/Wc/W12 bf16, double-buffered
                + 3 * tm * hp * 4 * 2           # xs, xe, xd tiles
                + tm * hp * 4 * 2)              # output
    return pl.pallas_call(
        _edge_mlp_bn_kernel,
        out_shape=jax.ShapeDtypeStruct((e, hp), jnp.float32),
        grid=(pl.cdiv(e, tm),),
        in_specs=[
            pl.BlockSpec((tm, hp), row),
            pl.BlockSpec((tm, hp), row),
            pl.BlockSpec((tm, hp), row),
            pl.BlockSpec((hp, hp), full),
            pl.BlockSpec((hp, hp), full),
            pl.BlockSpec((hp, hp), full),
            pl.BlockSpec((1, hp), full),
            pl.BlockSpec((hp, hp), full),
            pl.BlockSpec((1, hp), full),
            pl.BlockSpec((1, hp), full),
            pl.BlockSpec((1, hp), full),
        ],
        out_specs=pl.BlockSpec((tm, hp), row),
        compiler_params=_compiler_params(vmem_est),
        cost_estimate=pl.CostEstimate(
            flops=8 * e * hp * hp, transcendentals=e * hp,
            bytes_accessed=4 * e * hp * 4 + 4 * hp * hp * 2),
    )(x_src, x_e, x_dst, wa, wb, wc, b1.reshape(1, hp), w2, b2.reshape(1, hp),
      scale.reshape(1, hp), shift.reshape(1, hp))


# ---------------------------------------------------------------------------
# Plain-JAX glue (gather / segment ops, tiny context MLP)
# ---------------------------------------------------------------------------
def segment_softmax(logits, seg_ids, num_segments):
    seg_max = jax.ops.segment_max(logits, seg_ids, num_segments=num_segments)
    seg_max = jnp.where(jnp.isfinite(seg_max), seg_max, 0.0)
    ex = jnp.exp(logits - seg_max[seg_ids])
    denom = jax.ops.segment_sum(ex, seg_ids, num_segments=num_segments)
    return ex / (denom[seg_ids] + 1e-16)     # matches torch_geometric softmax


def scatter_mean(x, seg_ids, num_segments):
    cnt = jax.ops.segment_sum(jnp.ones((x.shape[0], 1), x.dtype), seg_ids,
                              num_segments=num_segments)
    tot = jax.ops.segment_sum(x, seg_ids, num_segments=num_segments)
    return tot / jnp.maximum(cnt, 1.0)


# ---------------------------------------------------------------------------
# Model forward
# ---------------------------------------------------------------------------
def transformer_conv(p, h_V_p, src, dst, h_E_p, *, heads, real_h, hp):
    """torch_geometric TransformerConv: root_weight=False, concat=True (eval)."""
    n_nodes = h_V_p.shape[0]
    n_edges = src.shape[0]
    c = real_h // heads
    qkv = pallas_linear(h_V_p, p["qkv_w"], p["qkv_b"])     # fused Q|K|V: [N, 3*Hp]
    q, k, v = qkv[:, :hp], qkv[:, hp:2 * hp], qkv[:, 2 * hp:]
    e = pallas_linear(h_E_p, p["e_w"], None)                # lin_edge (no bias)
    # TODO(synk): fuse k[src]+e / q[dst] / per-head logits / alpha*msg into one
    #             Pallas kernel with scalar-prefetched src/dst; XLA glue for now.
    k_j = (k[src] + e)[:, :real_h].reshape(n_edges, heads, c)
    q_i = q[dst][:, :real_h].reshape(n_edges, heads, c)
    logits = jnp.sum(q_i * k_j, axis=-1) * (1.0 / math.sqrt(c))   # [E, heads]
    alpha = segment_softmax(logits, dst, n_nodes)                 # softmax over dst
    msg = ((v[src] + e)[:, :real_h].reshape(n_edges, heads, c)
           * alpha[..., None]).reshape(n_edges, real_h)
    dh = jax.ops.segment_sum(msg, dst, num_segments=n_nodes)      # [N, real_h]
    return _pad_cols(dh, hp)


def gnn_layer(p, h_V, edge_index, h_E, batch_id, *, num_graphs, heads):
    real_h = h_V.shape[1]
    hp = p["ln0"]["g"].shape[0]                  # padded hidden (multiple of 128)
    src, dst = edge_index[0], edge_index[1]

    # one-time pad into the lane-dense on-device layout (pad lanes stay 0)
    h_V_p = _pad_cols(h_V, hp)
    h_E_p = _pad_cols(h_E, hp)

    # attention, then fused [residual + LN0 + FFN + residual + LN1]
    dh_p = transformer_conv(p["attn"], h_V_p, src, dst, h_E_p,
                            heads=heads, real_h=real_h, hp=hp)
    h_V_p = pallas_attn_ffn_block(h_V_p, dh_p,
                                  p["ln0"]["g"], p["ln0"]["b"],
                                  p["ffn1"]["w"], p["ffn1"]["b"],
                                  p["ffn2"]["w"], p["ffn2"]["b"],
                                  p["ln1"]["g"], p["ln1"]["b"], real_h=real_h)

    # EdgeMLP + residual + BatchNorm (eval), fully fused; no [E,3H] concat
    # TODO(synk): gather h_V_p[src]/[dst] in-kernel via scalar prefetch instead of XLA.
    h_E_p = pallas_edge_mlp_bn(h_V_p[src], h_E_p, h_V_p[dst],
                               p["edge_W11a"], p["edge_W11b"], p["edge_W11c"],
                               p["edge_b11"], p["edge_W12_w"], p["edge_W12_b"],
                               p["edge_bn_scale"], p["edge_bn_shift"])

    # single slice back to the real hidden width
    h_V_r = h_V_p[:, :real_h]
    h_E_r = h_E_p[:, :real_h]

    # Context gate: MLP on [num_graphs, H] is tiny -> plain XLA
    c_V = scatter_mean(h_V_r, batch_id, num_graphs)
    gate = jnp.maximum(c_V @ p["ctx_W1"]["w"] + p["ctx_W1"]["b"], 0.0)
    gate = jax.nn.sigmoid(gate @ p["ctx_W2"]["w"] + p["ctx_W2"]["b"])
    h_V_r = h_V_r * gate[batch_id]
    return h_V_r, h_E_r


@functools.partial(jax.jit, static_argnames=("num_graphs", "heads"))
def gnn_layer_forward(params, h_V, edge_index, h_E, batch_id, *, num_graphs,
                      heads):
    return gnn_layer(params, h_V, edge_index, h_E, batch_id,
                     num_graphs=num_graphs, heads=heads)


# ---------------------------------------------------------------------------
# Deterministic parameter init (PyTorch-like) with padding / folding at prep time
# ---------------------------------------------------------------------------
def init_linear(key, din, dout, bias=True):
    k1, k2 = jax.random.split(key)
    std = 1.0 / math.sqrt(din)
    w = jax.random.uniform(k1, (din, dout), jnp.float32, -std, std)
    b = jax.random.uniform(k2, (dout,), jnp.float32, -std, std) if bias else None
    return {"w": w, "b": b}


def init_bn(h):
    return {"gamma": jnp.ones((h,), jnp.float32),
            "beta": jnp.zeros((h,), jnp.float32),
            "mean": jnp.zeros((h,), jnp.float32),
            "var": jnp.ones((h,), jnp.float32)}


def init_gnn_layer(key, h):
    hp = _round_up(h, 128)           # lane-dense padded hidden
    f4 = 4 * h
    f4p = _round_up(f4, 128)
    ks = jax.random.split(key, 12)
    bf = lambda w: w.astype(jnp.bfloat16)     # MXU operands stored bf16

    q = init_linear(ks[0], h, h)
    k = init_linear(ks[1], h, h)
    v = init_linear(ks[2], h, h)
    e = init_linear(ks[3], h, h, bias=False)  # TransformerConv.lin_edge: bias=False
    ffn1 = init_linear(ks[4], h, f4)
    ffn2 = init_linear(ks[5], f4, h)
    w11 = init_linear(ks[6], 3 * h, h)
    w12 = init_linear(ks[7], h, h)
    bn = init_bn(h)
    eps = 1e-5
    bn_scale = bn["gamma"] / jnp.sqrt(bn["var"] + eps)   # eval-mode BN folded
    bn_shift = bn["beta"] - bn["mean"] * bn_scale

    return {
        "attn": {
            # Q|K|V fused, each padded to its own 128-lane slot -> [hp, 3*hp]
            "qkv_w": bf(jnp.concatenate([_pad2(q["w"], hp, hp),
                                         _pad2(k["w"], hp, hp),
                                         _pad2(v["w"], hp, hp)], axis=1)),
            "qkv_b": jnp.concatenate([_pad1(q["b"], hp), _pad1(k["b"], hp),
                                      _pad1(v["b"], hp)]),
            "e_w": bf(_pad2(e["w"], hp, hp)),
        },
        # gamma/beta padded with zeros so LN output pad lanes stay exactly 0
        "ln0": {"g": _pad1(jnp.ones((h,), jnp.float32), hp),
                "b": jnp.zeros((hp,), jnp.float32)},
        "ln1": {"g": _pad1(jnp.ones((h,), jnp.float32), hp),
                "b": jnp.zeros((hp,), jnp.float32)},
        "ffn1": {"w": bf(_pad2(ffn1["w"], hp, f4p)), "b": _pad1(ffn1["b"], f4p)},
        "ffn2": {"w": bf(_pad2(ffn2["w"], f4p, hp)), "b": _pad1(ffn2["b"], hp)},
        # W11 split into K-slices for the concat-free fused edge kernel
        "edge_W11a": bf(_pad2(w11["w"][:h], hp, hp)),
        "edge_W11b": bf(_pad2(w11["w"][h:2 * h], hp, hp)),
        "edge_W11c": bf(_pad2(w11["w"][2 * h:], hp, hp)),
        "edge_b11": _pad1(w11["b"], hp),
        "edge_W12_w": bf(_pad2(w12["w"], hp, hp)),
        "edge_W12_b": _pad1(w12["b"], hp),
        "edge_bn_scale": _pad1(bn_scale, hp),
        "edge_bn_shift": _pad1(bn_shift, hp),
        # context MLP stays f32 / plain XLA (num_graphs is tiny)
        "ctx_W1": init_linear(ks[8], h, h),
        "ctx_W2": init_linear(ks[9], h, h),
    }


# ---------------------------------------------------------------------------
if __name__ == "__main__":
    key = jax.random.PRNGKey(0)
    N_NODES, N_EDGES, N_GRAPHS = 16, 48, 2
    HIDDEN, HEADS = 32, 4

    k_hv, k_he, k_src, k_dst, k_par = jax.random.split(key, 5)
    h_V = jax.random.normal(k_hv, (N_NODES, HIDDEN), jnp.float32)
    h_E = jax.random.normal(k_he, (N_EDGES, HIDDEN), jnp.float32)
    src = jax.random.randint(k_src, (N_EDGES,), 0, N_NODES)
    dst = jax.random.randint(k_dst, (N_EDGES,), 0, N_NODES)
    edge_index = jnp.stack([src, dst]).astype(jnp.int32)     # [2, E]
    batch_id = jnp.concatenate(
        [jnp.zeros((N_NODES // 2,), jnp.int32),
         jnp.ones((N_NODES - N_NODES // 2,), jnp.int32)])    # [N]

    params = init_gnn_layer(k_par, HIDDEN)

    h_V_out, h_E_out = gnn_layer_forward(params, h_V, edge_index, h_E, batch_id,
                                         num_graphs=N_GRAPHS, heads=HEADS)
    h_V_out = jax.block_until_ready(h_V_out)
    h_E_out = jax.block_until_ready(h_E_out)

    assert h_V_out.shape == (N_NODES, HIDDEN), h_V_out.shape
    assert h_E_out.shape == (N_EDGES, HIDDEN), h_E_out.shape
    assert bool(jnp.all(jnp.isfinite(h_V_out)))
    assert bool(jnp.all(jnp.isfinite(h_E_out)))
    print("KERNEL_OK")
</pallas_src>

<mosaic_0001>
module attributes {stable_mosaic.version = 11 : i64} {
  func.func @_matmul_bias_kernel(%arg0: i32, %arg1: memref<16x128xf32, #tpu.memory_space<vmem>>, %arg2: memref<128x384xbf16, #tpu.memory_space<vmem>>, %arg3: memref<1x384xf32, #tpu.memory_space<vmem>>, %arg4: memref<16x384xf32, #tpu.memory_space<vmem>>) attributes {dimension_semantics = [#tpu.dimension_semantics<parallel>], iteration_bounds = array<i64: 1>, scalar_prefetch = 0 : i64, scratch_operands = 0 : i64, tpu.core_type = #tpu.core_type<tc>, window_params = [{transform_indices = @transform_0, window_bounds = array<i64: 16, 128>}, {pipeline_mode = #tpu.pipeline_mode<synchronous>, transform_indices = @transform_1, window_bounds = array<i64: 128, 384>}, {pipeline_mode = #tpu.pipeline_mode<synchronous>, transform_indices = @transform_2, window_bounds = array<i64: 1, 384>}, {transform_indices = @transform_3, window_bounds = array<i64: 16, 384>}]} {
    %c0 = arith.constant 0 : index
    %c0_0 = arith.constant 0 : index
    %0 = vector.load %arg1[%c0, %c0_0] : memref<16x128xf32, #tpu.memory_space<vmem>>, vector<16x128xf32>
    %1 = arith.truncf %0 : vector<16x128xf32> to vector<16x128xbf16>
    %c0_1 = arith.constant 0 : index
    %c0_2 = arith.constant 0 : index
    %2 = vector.load %arg2[%c0_1, %c0_2] : memref<128x384xbf16, #tpu.memory_space<vmem>>, vector<128x384xbf16>
    %cst = arith.constant dense<0.000000e+00> : vector<16x384xf32>
    %3 = tpu.matmul %1, %2, %cst {dimension_numbers = #tpu.dot_dimension_numbers<[1], [0], [0], [1], [0, 0, 1, 1], [], []>} : vector<16x128xbf16>, vector<128x384xbf16>, vector<16x384xf32> -> vector<16x384xf32>
    %c0_3 = arith.constant 0 : index
    %c0_4 = arith.constant 0 : index
    %4 = vector.load %arg3[%c0_3, %c0_4] : memref<1x384xf32, #tpu.memory_space<vmem>>, vector<1x384xf32>
    %5 = vector.broadcast %4 : vector<1x384xf32> to vector<16x384xf32>
    %6 = arith.addf %3, %5 : vector<16x384xf32>
    %c0_5 = arith.constant 0 : index
    %c0_6 = arith.constant 0 : index
    %7 = vector.load %arg4[%c0_5, %c0_6] : memref<16x384xf32, #tpu.memory_space<vmem>>, vector<16x384xf32>
    tpu.vector_store %arg4[%c0_5, %c0_6], %6 {strides = array<i32>} : memref<16x384xf32, #tpu.memory_space<vmem>>, vector<16x384xf32>,
    return
  }
  func.func @transform_0(%arg0: i32) -> (i32, i32) {
    %c0_i32 = arith.constant 0 : i32
    %c0_i32_0 = arith.constant 0 : i32
    return %arg0, %c0_i32 : i32, i32
  }
  func.func @transform_1(%arg0: i32) -> (i32, i32) {
    %c0_i32 = arith.constant 0 : i32
    %c0_i32_0 = arith.constant 0 : i32
    %c0_i32_1 = arith.constant 0 : i32
    return %c0_i32, %c0_i32_0 : i32, i32
  }
  func.func @transform_2(%arg0: i32) -> (i32, i32) {
    %c0_i32 = arith.constant 0 : i32
    %c0_i32_0 = arith.constant 0 : i32
    %c0_i32_1 = arith.constant 0 : i32
    return %c0_i32, %c0_i32_0 : i32, i32
  }
  func.func @transform_3(%arg0: i32) -> (i32, i32) {
    %c0_i32 = arith.constant 0 : i32
    %c0_i32_0 = arith.constant 0 : i32
    return %arg0, %c0_i32 : i32, i32
  }
}

module attributes {stable_mosaic.version = 11 : i64} {
  func.func @_matmul_bias_kernel(%arg0: i32, %arg1: memref<48x128xf32, #tpu.memory_space<vmem>>, %arg2: memref<128x128xbf16, #tpu.memory_space<vmem>>, %arg3: memref<1x128xf32, #tpu.memory_space<vmem>>, %arg4: memref<48x128xf32, #tpu.memory_space<vmem>>) attributes {dimension_semantics = [#tpu.dimension_semantics<parallel>], iteration_bounds = array<i64: 1>, scalar_prefetch = 0 : i64, scratch_operands = 0 : i64, tpu.core_type = #tpu.core_type<tc>, window_params = [{transform_indices = @transform_0, window_bounds = array<i64: 48, 128>}, {pipeline_mode = #tpu.pipeline_mode<synchronous>, transform_indices = @transform_1, window_bounds = array<i64: 128, 128>}, {pipeline_mode = #tpu.pipeline_mode<synchronous>, transform_indices = @transform_2, window_bounds = array<i64: 1, 128>}, {transform_indices = @transform_3, window_bounds = array<i64: 48, 128>}]} {
    %c0 = arith.constant 0 : index
    %c0_0 = arith.constant 0 : index
    %0 = vector.load %arg1[%c0, %c0_0] : memref<48x128xf32, #tpu.memory_space<vmem>>, vector<48x128xf32>
    %1 = arith.truncf %0 : vector<48x128xf32> to vector<48x128xbf16>
    %c0_1 = arith.constant 0 : index
    %c0_2 = arith.constant 0 : index
    %2 = vector.load %arg2[%c0_1, %c0_2] : memref<128x128xbf16, #tpu.memory_space<vmem>>, vector<128x128xbf16>
    %cst = arith.constant dense<0.000000e+00> : vector<48x128xf32>
    %3 = tpu.matmul %1, %2, %cst {dimension_numbers = #tpu.dot_dimension_numbers<[1], [0], [0], [1], [0, 0, 1, 1], [], []>} : vector<48x128xbf16>, vector<128x128xbf16>, vector<48x128xf32> -> vector<48x128xf32>
    %c0_3 = arith.constant 0 : index
    %c0_4 = arith.constant 0 : index
    %4 = vector.load %arg3[%c0_3, %c0_4] : memref<1x128xf32, #tpu.memory_space<vmem>>, vector<1x128xf32>
    %5 = vector.broadcast %4 : vector<1x128xf32> to vector<48x128xf32>
    %6 = arith.addf %3, %5 : vector<48x128xf32>
    %c0_5 = arith.constant 0 : index
    %c0_6 = arith.constant 0 : index
    %7 = vector.load %arg4[%c0_5, %c0_6] : memref<48x128xf32, #tpu.memory_space<vmem>>, vector<48x128xf32>
    tpu.vector_store %arg4[%c0_5, %c0_6], %6 {strides = array<i32>} : memref<48x128xf32, #tpu.memory_space<vmem>>, vector<48x128xf32>,
    return
  }
  func.func @transform_0(%arg0: i32) -> (i32, i32) {
    %c0_i32 = arith.constant 0 : i32
    %c0_i32_0 = arith.constant 0 : i32
    return %arg0, %c0_i32 : i32, i32
  }
  func.func @transform_1(%arg0: i32) -> (i32, i32) {
    %c0_i32 = arith.constant 0 : i32
    %c0_i32_0 = arith.constant 0 : i32
    %c0_i32_1 = arith.constant 0 : i32
    return %c0_i32, %c0_i32_0 : i32, i32
  }
  func.func @transform_2(%arg0: i32) -> (i32, i32) {
    %c0_i32 = arith.constant 0 : i32
    %c0_i32_0 = arith.constant 0 : i32
    %c0_i32_1 = arith.constant 0 : i32
    return %c0_i32, %c0_i32_0 : i32, i32
  }
  func.func @transform_3(%arg0: i32) -> (i32, i32) {
    %c0_i32 = arith.constant 0 : i32
    %c0_i32_0 = arith.constant 0 : i32
    return %arg0, %c0_i32 : i32, i32
  }
}

module attributes {stable_mosaic.version = 11 : i64} {
  func.func @_edge_mlp_bn_kernel(%arg0: i32, %arg1: memref<48x128xf32, #tpu.memory_space<vmem>>, %arg2: memref<48x128xf32, #tpu.memory_space<vmem>>, %arg3: memref<48x128xf32, #tpu.memory_space<vmem>>, %arg4: memref<128x128xbf16, #tpu.memory_space<vmem>>, %arg5: memref<128x128xbf16, #tpu.memory_space<vmem>>, %arg6: memref<128x128xbf16, #tpu.memory_space<vmem>>, %arg7: memref<1x128xf32, #tpu.memory_space<vmem>>, %arg8: memref<128x128xbf16, #tpu.memory_space<vmem>>, %arg9: memref<1x128xf32, #tpu.memory_space<vmem>>, %arg10: memref<1x128xf32, #tpu.memory_space<vmem>>, %arg11: memref<1x128xf32, #tpu.memory_space<vmem>>, %arg12: memref<48x128xf32, #tpu.memory_space<vmem>>) attributes {dimension_semantics = [#tpu.dimension_semantics<parallel>], iteration_bounds = array<i64: 1>, scalar_prefetch = 0 : i64, scratch_operands = 0 : i64, tpu.core_type = #tpu.core_type<tc>, window_params = [{transform_indices = @transform_0, window_bounds = array<i64: 48, 128>}, {transform_indices = @transform_1, window_bounds = array<i64: 48, 128>}, {transform_indices = @transform_2, window_bounds = array<i64: 48, 128>}, {pipeline_mode = #tpu.pipeline_mode<synchronous>, transform_indices = @transform_3, window_bounds = array<i64: 128, 128>}, {pipeline_mode = #tpu.pipeline_mode<synchronous>, transform_indices = @transform_4, window_bounds = array<i64: 128, 128>}, {pipeline_mode = #tpu.pipeline_mode<synchronous>, transform_indices = @transform_5, window_bounds = array<i64: 128, 128>}, {pipeline_mode = #tpu.pipeline_mode<synchronous>, transform_indices = @transform_6, window_bounds = array<i64: 1, 128>}, {pipeline_mode = #tpu.pipeline_mode<synchronous>, transform_indices = @transform_7, window_bounds = array<i64: 128, 128>}, {pipeline_mode = #tpu.pipeline_mode<synchronous>, transform_indices = @transform_8, window_bounds = array<i64: 1, 128>}, {pipeline_mode = #tpu.pipeline_mode<synchronous>, transform_indices = @transform_9, window_bounds = array<i64: 1, 128>}, {pipeline_mode = #tpu.pipeline_mode<synchronous>, transform_indices = @transform_10, window_bounds = array<i64: 1, 128>}, {transform_indices = @transform_11, window_bounds = array<i64: 48, 128>}]} {
    %c0 = arith.constant 0 : index
    %c0_0 = arith.constant 0 : index
    %0 = vector.load %arg2[%c0, %c0_0] : memref<48x128xf32, #tpu.memory_space<vmem>>, vector<48x128xf32>
    %c0_1 = arith.constant 0 : index
    %c0_2 = arith.constant 0 : index
    %1 = vector.load %arg1[%c0_1, %c0_2] : memref<48x128xf32, #tpu.memory_space<vmem>>, vector<48x128xf32>
    %2 = arith.truncf %1 : vector<48x128xf32> to vector<48x128xbf16>
    %c0_3 = arith.constant 0 : index
    %c0_4 = arith.constant 0 : index
    %3 = vector.load %arg4[%c0_3, %c0_4] : memref<128x128xbf16, #tpu.memory_space<vmem>>, vector<128x128xbf16>
    %cst = arith.constant dense<0.000000e+00> : vector<48x128xf32>
    %4 = tpu.matmul %2, %3, %cst {dimension_numbers = #tpu.dot_dimension_numbers<[1], [0], [0], [1], [0, 0, 1, 1], [], []>} : vector<48x128xbf16>, vector<128x128xbf16>, vector<48x128xf32> -> vector<48x128xf32>
    %5 = arith.truncf %0 : vector<48x128xf32> to vector<48x128xbf16>
    %c0_5 = arith.constant 0 : index
    %c0_6 = arith.constant 0 : index
    %6 = vector.load %arg5[%c0_5, %c0_6] : memref<128x128xbf16, #tpu.memory_space<vmem>>, vector<128x128xbf16>
    %cst_7 = arith.constant dense<0.000000e+00> : vector<48x128xf32>
    %7 = tpu.matmul %5, %6, %cst_7 {dimension_numbers = #tpu.dot_dimension_numbers<[1], [0], [0], [1], [0, 0, 1, 1], [], []>} : vector<48x128xbf16>, vector<128x128xbf16>, vector<48x128xf32> -> vector<48x128xf32>
    %8 = arith.addf %4, %7 : vector<48x128xf32>
    %c0_8 = arith.constant 0 : index
    %c0_9 = arith.constant 0 : index
    %9 = vector.load %arg3[%c0_8, %c0_9] : memref<48x128xf32, #tpu.memory_space<vmem>>, vector<48x128xf32>
    %10 = arith.truncf %9 : vector<48x128xf32> to vector<48x128xbf16>
    %c0_10 = arith.constant 0 : index
    %c0_11 = arith.constant 0 : index
    %11 = vector.load %arg6[%c0_10, %c0_11] : memref<128x128xbf16, #tpu.memory_space<vmem>>, vector<128x128xbf16>
    %cst_12 = arith.constant dense<0.000000e+00> : vector<48x128xf32>
    %12 = tpu.matmul %10, %11, %cst_12 {dimension_numbers = #tpu.dot_dimension_numbers<[1], [0], [0], [1], [0, 0, 1, 1], [], []>} : vector<48x128xbf16>, vector<128x128xbf16>, vector<48x128xf32> -> vector<48x128xf32>
    %13 = arith.addf %8, %12 : vector<48x128xf32>
    %c0_13 = arith.constant 0 : index
    %c0_14 = arith.constant 0 : index
    %14 = vector.load %arg7[%c0_13, %c0_14] : memref<1x128xf32, #tpu.memory_space<vmem>>, vector<1x128xf32>
    %15 = vector.broadcast %14 : vector<1x128xf32> to vector<48x128xf32>
    %16 = arith.addf %13, %15 : vector<48x128xf32>
    %cst_15 = arith.constant 5.000000e-01 : f32
    %17 = vector.broadcast %cst_15 : f32 to vector<48x128xf32>
    %18 = arith.mulf %17, %16 : vector<48x128xf32>
    %cst_16 = arith.constant 0.707106769 : f32
    %19 = vector.broadcast %cst_16 : f32 to vector<48x128xf32>
    %20 = arith.mulf %16, %19 : vector<48x128xf32>
    %21 = math.erf %20 : vector<48x128xf32>
    %cst_17 = arith.constant 1.000000e+00 : f32
    %22 = vector.broadcast %cst_17 : f32 to vector<48x128xf32>
    %23 = arith.addf %22, %21 : vector<48x128xf32>
    %24 = arith.mulf %18, %23 : vector<48x128xf32>
    %25 = arith.truncf %24 : vector<48x128xf32> to vector<48x128xbf16>
    %c0_18 = arith.constant 0 : index
    %c0_19 = arith.constant 0 : index
    %26 = vector.load %arg8[%c0_18, %c0_19] : memref<128x128xbf16, #tpu.memory_space<vmem>>, vector<128x128xbf16>
    %cst_20 = arith.constant dense<0.000000e+00> : vector<48x128xf32>
    %27 = tpu.matmul %25, %26, %cst_20 {dimension_numbers = #tpu.dot_dimension_numbers<[1], [0], [0], [1], [0, 0, 1, 1], [], []>} : vector<48x128xbf16>, vector<128x128xbf16>, vector<48x128xf32> -> vector<48x128xf32>
    %c0_21 = arith.constant 0 : index
    %c0_22 = arith.constant 0 : index
    %28 = vector.load %arg9[%c0_21, %c0_22] : memref<1x128xf32, #tpu.memory_space<vmem>>, vector<1x128xf32>
    %29 = vector.broadcast %28 : vector<1x128xf32> to vector<48x128xf32>
    %30 = arith.addf %27, %29 : vector<48x128xf32>
    %31 = arith.addf %0, %30 : vector<48x128xf32>
    %c0_23 = arith.constant 0 : index
    %c0_24 = arith.constant 0 : index
    %32 = vector.load %arg10[%c0_23, %c0_24] : memref<1x128xf32, #tpu.memory_space<vmem>>, vector<1x128xf32>
    %33 = vector.broadcast %32 : vector<1x128xf32> to vector<48x128xf32>
    %34 = arith.mulf %31, %33 : vector<48x128xf32>
    %c0_25 = arith.constant 0 : index
    %c0_26 = arith.constant 0 : index
    %35 = vector.load %arg11[%c0_25, %c0_26] : memref<1x128xf32, #tpu.memory_space<vmem>>, vector<1x128xf32>
    %36 = vector.broadcast %35 : vector<1x128xf32> to vector<48x128xf32>
    %37 = arith.addf %34, %36 : vector<48x128xf32>
    %c0_27 = arith.constant 0 : index
    %c0_28 = arith.constant 0 : index
    %38 = vector.load %arg12[%c0_27, %c0_28] : memref<48x128xf32, #tpu.memory_space<vmem>>, vector<48x128xf32>
    tpu.vector_store %arg12[%c0_27, %c0_28], %37 {strides = array<i32>} : memref<48x128xf32, #tpu.memory_space<vmem>>, vector<48x128xf32>,
    return
  }
  func.func @transform_0(%arg0: i32) -> (i32, i32) {
    %c0_i32 = arith.constant 0 : i32
    %c0_i32_0 = arith.constant 0 : i32
    return %arg0, %c0_i32 : i32, i32
  }
  func.func @transform_1(%arg0: i32) -> (i32, i32) {
    %c0_i32 = arith.constant 0 : i32
    %c0_i32_0 = arith.constant 0 : i32
    return %arg0, %c0_i32 : i32, i32
  }
  func.func @transform_2(%arg0: i32) -> (i32, i32) {
    %c0_i32 = arith.constant 0 : i32
    %c0_i32_0 = arith.constant 0 : i32
    return %arg0, %c0_i32 : i32, i32
  }
  func.func @transform_3(%arg0: i32) -> (i32, i32) {
    %c0_i32 = arith.constant 0 : i32
    %c0_i32_0 = arith.constant 0 : i32
    %c0_i32_1 = arith.constant 0 : i32
    return %c0_i32, %c0_i32_0 : i32, i32
  }
  func.func @transform_4(%arg0: i32) -> (i32, i32) {
    %c0_i32 = arith.constant 0 : i32
    %c0_i32_0 = arith.constant 0 : i32
    %c0_i32_1 = arith.constant 0 : i32
    return %c0_i32, %c0_i32_0 : i32, i32
  }
  func.func @transform_5(%arg0: i32) -> (i32, i32) {
    %c0_i32 = arith.constant 0 : i32
    %c0_i32_0 = arith.constant 0 : i32
    %c0_i32_1 = arith.constant 0 : i32
    return %c0_i32, %c0_i32_0 : i32, i32
  }
  func.func @transform_6(%arg0: i32) -> (i32, i32) {
    %c0_i32 = arith.constant 0 : i32
    %c0_i32_0 = arith.constant 0 : i32
    %c0_i32_1 = arith.constant 0 : i32
    return %c0_i32, %c0_i32_0 : i32, i32
  }
  func.func @transform_7(%arg0: i32) -> (i32, i32) {
    %c0_i32 = arith.constant 0 : i32
    %c0_i32_0 = arith.constant 0 : i32
    %c0_i32_1 = arith.constant 0 : i32
    return %c0_i32, %c0_i32_0 : i32, i32
  }
  func.func @transform_8(%arg0: i32) -> (i32, i32) {
    %c0_i32 = arith.constant 0 : i32
    %c0_i32_0 = arith.constant 0 : i32
    %c0_i32_1 = arith.constant 0 : i32
    return %c0_i32, %c0_i32_0 : i32, i32
  }
  func.func @transform_9(%arg0: i32) -> (i32, i32) {
    %c0_i32 = arith.constant 0 : i32
    %c0_i32_0 = arith.constant 0 : i32
    %c0_i32_1 = arith.constant 0 : i32
    return %c0_i32, %c0_i32_0 : i32, i32
  }
  func.func @transform_10(%arg0: i32) -> (i32, i32) {
    %c0_i32 = arith.constant 0 : i32
    %c0_i32_0 = arith.constant 0 : i32
    %c0_i32_1 = arith.constant 0 : i32
    return %c0_i32, %c0_i32_0 : i32, i32
  }
  func.func @transform_11(%arg0: i32) -> (i32, i32) {
    %c0_i32 = arith.constant 0 : i32
    %c0_i32_0 = arith.constant 0 : i32
    return %arg0, %c0_i32 : i32, i32
  }
}

module attributes {stable_mosaic.version = 11 : i64} {
  func.func @_resln_ffn_resln_kernel(%arg0: i32, %arg1: memref<16x128xf32, #tpu.memory_space<vmem>>, %arg2: memref<16x128xf32, #tpu.memory_space<vmem>>, %arg3: memref<1x128xf32, #tpu.memory_space<vmem>>, %arg4: memref<1x128xf32, #tpu.memory_space<vmem>>, %arg5: memref<128x128xbf16, #tpu.memory_space<vmem>>, %arg6: memref<1x128xf32, #tpu.memory_space<vmem>>, %arg7: memref<128x128xbf16, #tpu.memory_space<vmem>>, %arg8: memref<1x128xf32, #tpu.memory_space<vmem>>, %arg9: memref<1x128xf32, #tpu.memory_space<vmem>>, %arg10: memref<1x128xf32, #tpu.memory_space<vmem>>, %arg11: memref<16x128xf32, #tpu.memory_space<vmem>>) attributes {dimension_semantics = [#tpu.dimension_semantics<parallel>], iteration_bounds = array<i64: 1>, scalar_prefetch = 0 : i64, scratch_operands = 0 : i64, tpu.core_type = #tpu.core_type<tc>, window_params = [{transform_indices = @transform_0, window_bounds = array<i64: 16, 128>}, {transform_indices = @transform_1, window_bounds = array<i64: 16, 128>}, {pipeline_mode = #tpu.pipeline_mode<synchronous>, transform_indices = @transform_2, window_bounds = array<i64: 1, 128>}, {pipeline_mode = #tpu.pipeline_mode<synchronous>, transform_indices = @transform_3, window_bounds = array<i64: 1, 128>}, {pipeline_mode = #tpu.pipeline_mode<synchronous>, transform_indices = @transform_4, window_bounds = array<i64: 128, 128>}, {pipeline_mode = #tpu.pipeline_mode<synchronous>, transform_indices = @transform_5, window_bounds = array<i64: 1, 128>}, {pipeline_mode = #tpu.pipeline_mode<synchronous>, transform_indices = @transform_6, window_bounds = array<i64: 128, 128>}, {pipeline_mode = #tpu.pipeline_mode<synchronous>, transform_indices = @transform_7, window_bounds = array<i64: 1, 128>}, {pipeline_mode = #tpu.pipeline_mode<synchronous>, transform_indices = @transform_8, window_bounds = array<i64: 1, 128>}, {pipeline_mode = #tpu.pipeline_mode<synchronous>, transform_indices = @transform_9, window_bounds = array<i64: 1, 128>}, {transform_indices = @transform_10, window_bounds = array<i64: 16, 128>}]} {
    %0 = tpu.iota {dimensions = array<i32: 1>} : vector<1x128xi32>
    %c32_i32 = arith.constant 32 : i32
    %1 = vector.broadcast %c32_i32 : i32 to vector<1x128xi32>
    %2 = arith.cmpi slt, %0, %1 : vector<1x128xi32>
    %3 = arith.extui %2 : vector<1x128xi1> to vector<1x128xi32>
    %4 = arith.sitofp %3 : vector<1x128xi32> to vector<1x128xf32>
    %c0 = arith.constant 0 : index
    %c0_0 = arith.constant 0 : index
    %5 = vector.load %arg1[%c0, %c0_0] : memref<16x128xf32, #tpu.memory_space<vmem>>, vector<16x128xf32>
    %c0_1 = arith.constant 0 : index
    %c0_2 = arith.constant 0 : index
    %6 = vector.load %arg2[%c0_1, %c0_2] : memref<16x128xf32, #tpu.memory_space<vmem>>, vector<16x128xf32>
    %7 = arith.addf %5, %6 : vector<16x128xf32>
    %c0_3 = arith.constant 0 : index
    %c0_4 = arith.constant 0 : index
    %8 = vector.load %arg3[%c0_3, %c0_4] : memref<1x128xf32, #tpu.memory_space<vmem>>, vector<1x128xf32>
    %c0_5 = arith.constant 0 : index
    %c0_6 = arith.constant 0 : index
    %9 = vector.load %arg4[%c0_5, %c0_6] : memref<1x128xf32, #tpu.memory_space<vmem>>, vector<1x128xf32>
    %cst = arith.constant dense<0.000000e+00> : vector<16xf32>
    %10 = vector.multi_reduction <add>, %7, %cst [1] : vector<16x128xf32> to vector<16xf32>
    %11 = vector.shape_cast %10 : vector<16xf32> to vector<16x1xf32>
    %cst_7 = arith.constant 3.125000e-02 : f32
    %12 = vector.broadcast %cst_7 : f32 to vector<16x1xf32>
    %13 = arith.mulf %11, %12 : vector<16x1xf32>
    %14 = vector.broadcast %13 : vector<16x1xf32> to vector<16x128xf32>
    %15 = arith.subf %7, %14 : vector<16x128xf32>
    %16 = arith.mulf %15, %15 : vector<16x128xf32>
    %17 = vector.broadcast %4 : vector<1x128xf32> to vector<16x128xf32>
    %18 = arith.mulf %16, %17 : vector<16x128xf32>
    %cst_8 = arith.constant dense<0.000000e+00> : vector<16xf32>
    %19 = vector.multi_reduction <add>, %18, %cst_8 [1] : vector<16x128xf32> to vector<16xf32>
    %20 = vector.shape_cast %19 : vector<16xf32> to vector<16x1xf32>
    %cst_9 = arith.constant 3.125000e-02 : f32
    %21 = vector.broadcast %cst_9 : f32 to vector<16x1xf32>
    %22 = arith.mulf %20, %21 : vector<16x1xf32>
    %23 = vector.broadcast %13 : vector<16x1xf32> to vector<16x128xf32>
    %24 = arith.subf %7, %23 : vector<16x128xf32>
    %cst_10 = arith.constant 9.99999974E-6 : f32
    %25 = vector.broadcast %cst_10 : f32 to vector<16x1xf32>
    %26 = arith.addf %22, %25 : vector<16x1xf32>
    %27 = math.rsqrt %26 : vector<16x1xf32>
    %28 = vector.broadcast %27 : vector<16x1xf32> to vector<16x128xf32>
    %29 = arith.mulf %24, %28 : vector<16x128xf32>
    %30 = vector.broadcast %8 : vector<1x128xf32> to vector<16x128xf32>
    %31 = arith.mulf %29, %30 : vector<16x128xf32>
    %32 = vector.broadcast %9 : vector<1x128xf32> to vector<16x128xf32>
    %33 = arith.addf %31, %32 : vector<16x128xf32>
    %34 = arith.truncf %33 : vector<16x128xf32> to vector<16x128xbf16>
    %c0_11 = arith.constant 0 : index
    %c0_12 = arith.constant 0 : index
    %35 = vector.load %arg5[%c0_11, %c0_12] : memref<128x128xbf16, #tpu.memory_space<vmem>>, vector<128x128xbf16>
    %cst_13 = arith.constant dense<0.000000e+00> : vector<16x128xf32>
    %36 = tpu.matmul %34, %35, %cst_13 {dimension_numbers = #tpu.dot_dimension_numbers<[1], [0], [0], [1], [0, 0, 1, 1], [], []>} : vector<16x128xbf16>, vector<128x128xbf16>, vector<16x128xf32> -> vector<16x128xf32>
    %c0_14 = arith.constant 0 : index
    %c0_15 = arith.constant 0 : index
    %37 = vector.load %arg6[%c0_14, %c0_15] : memref<1x128xf32, #tpu.memory_space<vmem>>, vector<1x128xf32>
    %38 = vector.broadcast %37 : vector<1x128xf32> to vector<16x128xf32>
    %39 = arith.addf %36, %38 : vector<16x128xf32>
    %cst_16 = arith.constant 0.000000e+00 : f32
    %40 = vector.broadcast %cst_16 : f32 to vector<16x128xf32>
    %41 = arith.maximumf %39, %40 : vector<16x128xf32>
    %42 = arith.truncf %41 : vector<16x128xf32> to vector<16x128xbf16>
    %c0_17 = arith.constant 0 : index
    %c0_18 = arith.constant 0 : index
    %43 = vector.load %arg7[%c0_17, %c0_18] : memref<128x128xbf16, #tpu.memory_space<vmem>>, vector<128x128xbf16>
    %cst_19 = arith.constant dense<0.000000e+00> : vector<16x128xf32>
    %44 = tpu.matmul %42, %43, %cst_19 {dimension_numbers = #tpu.dot_dimension_numbers<[1], [0], [0], [1], [0, 0, 1, 1], [], []>} : vector<16x128xbf16>, vector<128x128xbf16>, vector<16x128xf32> -> vector<16x128xf32>
    %c0_20 = arith.constant 0 : index
    %c0_21 = arith.constant 0 : index
    %45 = vector.load %arg8[%c0_20, %c0_21] : memref<1x128xf32, #tpu.memory_space<vmem>>, vector<1x128xf32>
    %46 = vector.broadcast %45 : vector<1x128xf32> to vector<16x128xf32>
    %47 = arith.addf %44, %46 : vector<16x128xf32>
    %48 = arith.addf %47, %33 : vector<16x128xf32>
    %c0_22 = arith.constant 0 : index
    %c0_23 = arith.constant 0 : index
    %49 = vector.load %arg9[%c0_22, %c0_23] : memref<1x128xf32, #tpu.memory_space<vmem>>, vector<1x128xf32>
    %c0_24 = arith.constant 0 : index
    %c0_25 = arith.constant 0 : index
    %50 = vector.load %arg10[%c0_24, %c0_25] : memref<1x128xf32, #tpu.memory_space<vmem>>, vector<1x128xf32>
    %cst_26 = arith.constant dense<0.000000e+00> : vector<16xf32>
    %51 = vector.multi_reduction <add>, %48, %cst_26 [1] : vector<16x128xf32> to vector<16xf32>
    %52 = vector.shape_cast %51 : vector<16xf32> to vector<16x1xf32>
    %cst_27 = arith.constant 3.125000e-02 : f32
    %53 = vector.broadcast %cst_27 : f32 to vector<16x1xf32>
    %54 = arith.mulf %52, %53 : vector<16x1xf32>
    %55 = vector.broadcast %54 : vector<16x1xf32> to vector<16x128xf32>
    %56 = arith.subf %48, %55 : vector<16x128xf32>
    %57 = arith.mulf %56, %56 : vector<16x128xf32>
    %58 = vector.broadcast %4 : vector<1x128xf32> to vector<16x128xf32>
    %59 = arith.mulf %57, %58 : vector<16x128xf32>
    %cst_28 = arith.constant dense<0.000000e+00> : vector<16xf32>
    %60 = vector.multi_reduction <add>, %59, %cst_28 [1] : vector<16x128xf32> to vector<16xf32>
    %61 = vector.shape_cast %60 : vector<16xf32> to vector<16x1xf32>
    %cst_29 = arith.constant 3.125000e-02 : f32
    %62 = vector.broadcast %cst_29 : f32 to vector<16x1xf32>
    %63 = arith.mulf %61, %62 : vector<16x1xf32>
    %64 = vector.broadcast %54 : vector<16x1xf32> to vector<16x128xf32>
    %65 = arith.subf %48, %64 : vector<16x128xf32>
    %cst_30 = arith.constant 9.99999974E-6 : f32
    %66 = vector.broadcast %cst_30 : f32 to vector<16x1xf32>
    %67 = arith.addf %63, %66 : vector<16x1xf32>
    %68 = math.rsqrt %67 : vector<16x1xf32>
    %69 = vector.broadcast %68 : vector<16x1xf32> to vector<16x128xf32>
    %70 = arith.mulf %65, %69 : vector<16x128xf32>
    %71 = vector.broadcast %49 : vector<1x128xf32> to vector<16x128xf32>
    %72 = arith.mulf %70, %71 : vector<16x128xf32>
    %73 = vector.broadcast %50 : vector<1x128xf32> to vector<16x128xf32>
    %74 = arith.addf %72, %73 : vector<16x128xf32>
    %c0_31 = arith.constant 0 : index
    %c0_32 = arith.constant 0 : index
    %75 = vector.load %arg11[%c0_31, %c0_32] : memref<16x128xf32, #tpu.memory_space<vmem>>, vector<16x128xf32>
    tpu.vector_store %arg11[%c0_31, %c0_32], %74 {strides = array<i32>} : memref<16x128xf32, #tpu.memory_space<vmem>>, vector<16x128xf32>,
    return
  }
  func.func @transform_0(%arg0: i32) -> (i32, i32) {
    %c0_i32 = arith.constant 0 : i32
    %c0_i32_0 = arith.constant 0 : i32
    return %arg0, %c0_i32 : i32, i32
  }
  func.func @transform_1(%arg0: i32) -> (i32, i32) {
    %c0_i32 = arith.constant 0 : i32
    %c0_i32_0 = arith.constant 0 : i32
    return %arg0, %c0_i32 : i32, i32
  }
  func.func @transform_2(%arg0: i32) -> (i32, i32) {
    %c0_i32 = arith.constant 0 : i32
    %c0_i32_0 = arith.constant 0 : i32
    %c0_i32_1 = arith.constant 0 : i32
    return %c0_i32, %c0_i32_0 : i32, i32
  }
  func.func @transform_3(%arg0: i32) -> (i32, i32) {
    %c0_i32 = arith.constant 0 : i32
    %c0_i32_0 = arith.constant 0 : i32
    %c0_i32_1 = arith.constant 0 : i32
    return %c0_i32, %c0_i32_0 : i32, i32
  }
  func.func @transform_4(%arg0: i32) -> (i32, i32) {
    %c0_i32 = arith.constant 0 : i32
    %c0_i32_0 = arith.constant 0 : i32
    %c0_i32_1 = arith.constant 0 : i32
    return %c0_i32, %c0_i32_0 : i32, i32
  }
  func.func @transform_5(%arg0: i32) -> (i32, i32) {
    %c0_i32 = arith.constant 0 : i32
    %c0_i32_0 = arith.constant 0 : i32
    %c0_i32_1 = arith.constant 0 : i32
    return %c0_i32, %c0_i32_0 : i32, i32
  }
  func.func @transform_6(%arg0: i32) -> (i32, i32) {
    %c0_i32 = arith.constant 0 : i32
    %c0_i32_0 = arith.constant 0 : i32
    %c0_i32_1 = arith.constant 0 : i32
    return %c0_i32, %c0_i32_0 : i32, i32
  }
  func.func @transform_7(%arg0: i32) -> (i32, i32) {
    %c0_i32 = arith.constant 0 : i32
    %c0_i32_0 = arith.constant 0 : i32
    %c0_i32_1 = arith.constant 0 : i32
    return %c0_i32, %c0_i32_0 : i32, i32
  }
  func.func @transform_8(%arg0: i32) -> (i32, i32) {
    %c0_i32 = arith.constant 0 : i32
    %c0_i32_0 = arith.constant 0 : i32
    %c0_i32_1 = arith.constant 0 : i32
    return %c0_i32, %c0_i32_0 : i32, i32
  }
  func.func @transform_9(%arg0: i32) -> (i32, i32) {
    %c0_i32 = arith.constant 0 : i32
    %c0_i32_0 = arith.constant 0 : i32
    %c0_i32_1 = arith.constant 0 : i32
    return %c0_i32, %c0_i32_0 : i32, i32
  }
  func.func @transform_10(%arg0: i32) -> (i32, i32) {
    %c0_i32 = arith.constant 0 : i32
    %c0_i32_0 = arith.constant 0 : i32
    return %arg0, %c0_i32 : i32, i32
  }
}

</mosaic_0001>

<bundles_post_ra>
// kernel: gnn_layer_forward.5
= control target key start
LH: loop header
LB: loop body
LE: loop exit
PB: predicated region body
PF: predicated region fallthrough
CT: control target
= control target key end

     0   :  { %s265_s1 = inlined_call_operand.vmem [shape: bf16[128,128], index: 1, kind: input, shape index: {}]   ;;  %s266_s2 = inlined_call_operand.vmem [shape: f32[1,128], index: 2, kind: input, shape index: {}]   ;;  %s267_s0 = inlined_call_operand.vmem [shape: f32[48,128], index: 0, kind: input, shape index: {}]   ;;  %s268_s3 = inlined_call_operand.vmem [shape: f32[48,128], index: 3, kind: output, shape index: {}]  }
   0x1   :  { %v164_v0 = vld [vmem:[%s265_s1 + $0x38] sm:$0xff]  ;;  %v163_v1 = vld [vmem:[%s265_s1 + $0x30] sm:$0xff]  ;;  %v162_v2 = vld [vmem:[%s265_s1 + $0x28] sm:$0xff] }
   0x2   :  { %91 = vmatpush.bf16.msra.mxu0 %v164_v0  ;;  %165 = vmatpush.bf16.msra.mxu1 %v164_v0  ;;  %v161_v3 = vld [vmem:[%s265_s1 + $0x20] sm:$0xff]  ;;  %v160_v4 = vld [vmem:[%s265_s1 + $0x18] sm:$0xff]  ;;  %v159_v5 = vld [vmem:[%s265_s1 + $0x10] sm:$0xff] }
   0x3   :  { %166 = vmatpush.bf16.msra.mxu2 %v164_v0  ;;  %v158_v6 = vld [vmem:[%s265_s1 + $0x8] sm:$0xff]  ;;  %v157_v7 = vld [vmem:[%s265_s1] sm:$0xff]  ;;  %v16_v10 = vld [vmem:[%s267_s0 + $0x10] sm:$0xff] }
   0x4   :  { %v14_v8 = vld [vmem:[%s267_s0] sm:$0xff]  ;;  %v15_v9 = vld [vmem:[%s267_s0 + $0x8] sm:$0xff]  ;;  %v17_v11 = vld [vmem:[%s267_s0 + $0x18] sm:$0xff] }
   0x5   :  { %v18_v12 = vld [vmem:[%s267_s0 + $0x20] sm:$0xff]  ;;  %v19_v13 = vld [vmem:[%s267_s0 + $0x28] sm:$0xff]  ;;  %v20_v14 = vpack.c.bf16 %v15_v9, %v14_v8  ;;  %v21_v15 = vpack.c.bf16 %v17_v11, %v16_v10 }
   0x6   :  { %92 = vmatpush.bf16.msra.mxu0 %v163_v1  ;;  %167 = vmatpush.bf16.msra.mxu1 %v163_v1  ;;  %v22_v16 = vpack.c.bf16 %v19_v13, %v18_v12  ;;  %v181_v17 = vld [vmem:[%s266_s2] ss:$0 sm:$0xff] }
   0x7   :  { %168 = vmatpush.bf16.msra.mxu2 %v163_v1 }
   0xa   :  { %93 = vmatpush.bf16.msra.mxu0 %v162_v2  ;;  %169 = vmatpush.bf16.msra.mxu1 %v162_v2 }
   0xb   :  { %170 = vmatpush.bf16.msra.mxu2 %v162_v2 }
   0xe   :  { %94 = vmatpush.bf16.msra.mxu0 %v161_v3  ;;  %171 = vmatpush.bf16.msra.mxu1 %v161_v3 }
   0xf   :  { %172 = vmatpush.bf16.msra.mxu2 %v161_v3 }
  0x12   :  { %95 = vmatpush.bf16.msra.mxu0 %v160_v4  ;;  %173 = vmatpush.bf16.msra.mxu1 %v160_v4 }
  0x13   :  { %174 = vmatpush.bf16.msra.mxu2 %v160_v4 }
  0x16   :  { %96 = vmatpush.bf16.msra.mxu0 %v159_v5  ;;  %175 = vmatpush.bf16.msra.mxu1 %v159_v5 }
  0x17   :  { %176 = vmatpush.bf16.msra.mxu2 %v159_v5 }
  0x1a   :  { %97 = vmatpush.bf16.msra.mxu0 %v158_v6  ;;  %177 = vmatpush.bf16.msra.mxu1 %v158_v6 }
  0x1b   :  { %178 = vmatpush.bf16.msra.mxu2 %v158_v6 }
  0x1e   :  { %98 = vmatpush.bf16.msra.mxu0 %v157_v7  ;;  %179 = vmatpush.bf16.msra.mxu1 %v157_v7 }
  0x1f   :  { %180 = vmatpush.bf16.msra.mxu2 %v157_v7 }
  0x21   :  { %99 = vmatmul.bf16.vlgmr.msra.gmra.mxu0 %v20_v14  ;;  %104 = vmatmul.bf16.vlgmr.msra.gmra.mxu1 %v21_v15 }
  0x22   :  { %109 = vmatmul.bf16.vlgmr.msra.gmra.mxu2 %v22_v16 }
  0x9e   :  { %v100_v18 = vpop.f32.mrf.mxu0  ;;  %v105_v19 = vpop.f32.mrf.mxu1 }
  0x9f   :  { %v101_v20 = vadd.f32 %v181_v17, %v100_v18  ;;  %v106_v21 = vadd.f32 %v181_v17, %v105_v19 }
  0xa1   :  { %115 = vst [vmem:[%s268_s3] sm:$0xff] %v101_v20 }
  0xa2   :  { %117 = vst [vmem:[%s268_s3 + $0x10] sm:$0xff] %v106_v21 }
  0xa5   :  { %v110_v22 = vpop.f32.mrf.mxu2 }
  0xa6   :  { %v111_v23 = vadd.f32 %v181_v17, %v110_v22  ;;  %v102_v24 = vpop.f32.mrf.mxu0  ;;  %v107_v25 = vpop.f32.mrf.mxu1 }
  0xa7   :  { %v103_v26 = vadd.f32 %v181_v17, %v102_v24  ;;  %v108_v27 = vadd.f32 %v181_v17, %v107_v25 }
  0xa8   :  { %119 = vst [vmem:[%s268_s3 + $0x20] sm:$0xff] %v111_v23 }
  0xa9   :  { %116 = vst [vmem:[%s268_s3 + $0x8] sm:$0xff] %v103_v26 }
  0xaa   :  { %118 = vst [vmem:[%s268_s3 + $0x18] sm:$0xff] %v108_v27 }
  0xad   :  { %v112_v28 = vpop.f32.mrf.mxu2 }
  0xae   :  { %v113_v29 = vadd.f32 %v181_v17, %v112_v28 }
  0xb0   :  { %120 = vst [vmem:[%s268_s3 + $0x28] sm:$0xff] %v113_v29 }

// kernel: gnn_layer_forward.4
= control target key start
LH: loop header
LB: loop body
LE: loop exit
PB: predicated region body
PF: predicated region fallthrough
CT: control target
= control target key end

     0   :  { %8 = vsyncpa [#allocation3], 0  ;;  %s403_s15 = smov [#allocation2]   ;;  %s404_s17 = smov 192   ;;  %s456_s0 = inlined_call_operand.vmem [shape: f32[16,128], index: 0, kind: input, shape index: {}]   ;;  %s457_s1 = inlined_call_operand.hbm [shape: bf16[128,384], index: 1, kind: input, shape index: {}]   ;;  %s458_s2 = inlined_call_operand.vmem [shape: f32[1,384], index: 2, kind: input, shape index: {}]   ;;  %s459_s3 = inlined_call_operand.vmem [shape: f32[16,384], index: 3, kind: output, shape index: {}]  }
   0x1   :  { %s15_s14 = sshll.u32 %s457_s1, 4  ;;  %s17_s16 = sshll.u32 %s403_s15, 4  ;;  %s16_s14 = int_to_ptr.hbm [resolvable:$true] %s15_s14  ;;  %s18_s16 = int_to_ptr.vmem [resolvable:$true] %s17_s16 }
   0x2   :  { %s405_s18 = smov 12  }
   0x3   :  { %23 = dma.hbm_to_vmem [thread:$0]  %s16_s14, 3072, %s18_s16, [#allocation3], %s404_s17, %s404_s17, %s405_s18  }
   0x4   :  { %401 = dma.done.wait [#allocation3], 3072  }
   0x5   :  { %402 = vsyncadd [#allocation3], 4294964224  ;;  %v340_v0 = vld [vmem:[#allocation2 + $0xa8] sm:$0xf]  ;;  %v372_v1 = vld [vmem:[#allocation2 + $0xb0] sm:$0xf0] }
   0x6   :  { %v371_v2 = vld [vmem:[#allocation2 + $0xac] sm:$0xf]  ;;  %v341_v3 = vor.u32 %v372_v1, %v340_v0  ;;  %v342_v4 = vld [vmem:[#allocation2 + $0xb4] sm:$0xf0]  ;;  %v348_v5 = vld [vmem:[#allocation2 + $0xb0] sm:$0xf] }
   0x7   :  { %v373_v6 = vld [vmem:[#allocation2 + $0xb8] sm:$0xf0]  ;;  %v345_v7 = vor.u32 %v371_v2, %v342_v4  ;;  %v328_v9 = vld [vmem:[#allocation2 + $0x90] sm:$0xf]  ;;  %v368_v11 = vld [vmem:[#allocation2 + $0x94] sm:$0xf] }
   0x8   :  { %v349_v8 = vor.u32 %v373_v6, %v348_v5  ;;  %v369_v10 = vld [vmem:[#allocation2 + $0x98] sm:$0xf0]  ;;  %201 = vmatpush.bf16.msra.mxu0 %v341_v3  ;;  %v330_v13 = vld [vmem:[#allocation2 + $0x9c] sm:$0xf0]  ;;  %v336_v14 = vld [vmem:[#allocation2 + $0x98] sm:$0xf] }
   0x9   :  { %v329_v12 = vor.u32 %v369_v10, %v328_v9  ;;  %v370_v15 = vld [vmem:[#allocation2 + $0xa0] sm:$0xf0]  ;;  %215 = vmatpush.bf16.msra.mxu1 %v345_v7  ;;  %v333_v16 = vor.u32 %v368_v11, %v330_v13  ;;  %v316_v18 = vld [vmem:[#allocation2 + $0x78] sm:$0xf]  ;;  %v365_v20 = vld [vmem:[#allocation2 + $0x7c] sm:$0xf] }
   0xa   :  { %229 = vmatpush.bf16.msra.mxu2 %v349_v8  ;;  %v337_v17 = vor.u32 %v370_v15, %v336_v14  ;;  %v366_v19 = vld [vmem:[#allocation2 + $0x80] sm:$0xf0]  ;;  %v318_v21 = vld [vmem:[#allocation2 + $0x84] sm:$0xf0]  ;;  %v324_v22 = vld [vmem:[#allocation2 + $0x80] sm:$0xf] }
   0xb   :  { %v367_v23 = vld [vmem:[#allocation2 + $0x88] sm:$0xf0]  ;;  %v317_v24 = vor.u32 %v366_v19, %v316_v18  ;;  %v321_v25 = vor.u32 %v365_v20, %v318_v21  ;;  %v304_v27 = vld [vmem:[#allocation2 + $0x60] sm:$0xf]  ;;  %v362_v29 = vld [vmem:[#allocation2 + $0x64] sm:$0xf] }
   0xc   :  { %202 = vmatpush.bf16.msra.mxu0 %v329_v12  ;;  %v325_v26 = vor.u32 %v367_v23, %v324_v22  ;;  %v363_v28 = vld [vmem:[#allocation2 + $0x68] sm:$0xf0]  ;;  %v306_v30 = vld [vmem:[#allocation2 + $0x6c] sm:$0xf0]  ;;  %v312_v31 = vld [vmem:[#allocation2 + $0x68] sm:$0xf] }
   0xd   :  { %216 = vmatpush.bf16.msra.mxu1 %v333_v16  ;;  %v364_v32 = vld [vmem:[#allocation2 + $0x70] sm:$0xf0]  ;;  %v305_v33 = vor.u32 %v363_v28, %v304_v27  ;;  %v309_v34 = vor.u32 %v362_v29, %v306_v30  ;;  %v292_v36 = vld [vmem:[#allocation2 + $0x48] sm:$0xf]  ;;  %v359_v38 = vld [vmem:[#allocation2 + $0x4c] sm:$0xf] }
   0xe   :  { %230 = vmatpush.bf16.msra.mxu2 %v337_v17  ;;  %v313_v35 = vor.u32 %v364_v32, %v312_v31  ;;  %v360_v37 = vld [vmem:[#allocation2 + $0x50] sm:$0xf0]  ;;  %v294_v39 = vld [vmem:[#allocation2 + $0x54] sm:$0xf0]  ;;  %v300_v40 = vld [vmem:[#allocation2 + $0x50] sm:$0xf] }
   0xf   :  { %v361_v41 = vld [vmem:[#allocation2 + $0x58] sm:$0xf0]  ;;  %v293_v42 = vor.u32 %v360_v37, %v292_v36  ;;  %v297_v43 = vor.u32 %v359_v38, %v294_v39  ;;  %v280_v45 = vld [vmem:[#allocation2 + $0x30] sm:$0xf]  ;;  %v356_v47 = vld [vmem:[#allocation2 + $0x34] sm:$0xf] }
  0x10   :  { %203 = vmatpush.bf16.msra.mxu0 %v317_v24  ;;  %v301_v44 = vor.u32 %v361_v41, %v300_v40  ;;  %v357_v46 = vld [vmem:[#allocation2 + $0x38] sm:$0xf0]  ;;  %v282_v48 = vld [vmem:[#allocation2 + $0x3c] sm:$0xf0]  ;;  %v288_v49 = vld [vmem:[#allocation2 + $0x38] sm:$0xf] }
  0x11   :  { %217 = vmatpush.bf16.msra.mxu1 %v321_v25  ;;  %v358_v50 = vld [vmem:[#allocation2 + $0x40] sm:$0xf0]  ;;  %v281_v51 = vor.u32 %v357_v46, %v280_v45  ;;  %v285_v52 = vor.u32 %v356_v47, %v282_v48  ;;  %v268_v54 = vld [vmem:[#allocation2 + $0x18] sm:$0xf]  ;;  %v353_v56 = vld [vmem:[#allocation2 + $0x1c] sm:$0xf] }
  0x12   :  { %231 = vmatpush.bf16.msra.mxu2 %v325_v26  ;;  %v289_v53 = vor.u32 %v358_v50, %v288_v49  ;;  %v354_v55 = vld [vmem:[#allocation2 + $0x20] sm:$0xf0]  ;;  %v270_v57 = vld [vmem:[#allocation2 + $0x24] sm:$0xf0]  ;;  %v276_v58 = vld [vmem:[#allocation2 + $0x20] sm:$0xf] }
  0x13   :  { %v355_v59 = vld [vmem:[#allocation2 + $0x28] sm:$0xf0]  ;;  %v269_v60 = vor.u32 %v354_v55, %v268_v54  ;;  %v273_v61 = vor.u32 %v353_v56, %v270_v57  ;;  %v256_v63 = vld [vmem:[#allocation2] sm:$0xf]  ;;  %v350_v1 = vld [vmem:[#allocation2 + $0x4] sm:$0xf] }
  0x14   :  { %204 = vmatpush.bf16.msra.mxu0 %v305_v33  ;;  %v277_v62 = vor.u32 %v355_v59, %v276_v58  ;;  %v351_v0 = vld [vmem:[#allocation2 + $0x8] sm:$0xf0]  ;;  %v258_v2 = vld [vmem:[#allocation2 + $0xc] sm:$0xf0]  ;;  %v264_v3 = vld [vmem:[#allocation2 + $0x8] sm:$0xf] }
  0x15   :  { %218 = vmatpush.bf16.msra.mxu1 %v309_v34  ;;  %v352_v4 = vld [vmem:[#allocation2 + $0x10] sm:$0xf0]  ;;  %v257_v5 = vor.u32 %v351_v0, %v256_v63  ;;  %v30_v6 = vld [vmem:[%s456_s0] sm:$0xff]  ;;  %v31_v7 = vld [vmem:[%s456_s0 + $0x8] sm:$0xff]  ;;  %v261_v8 = vor.u32 %v350_v1, %v258_v2 }
  0x16   :  { %232 = vmatpush.bf16.msra.mxu2 %v313_v35  ;;  %v265_v9 = vor.u32 %v352_v4, %v264_v3  ;;  %v32_v10 = vpack.c.bf16 %v31_v7, %v30_v6  ;;  %v65_v11 = vld [vmem:[%s458_s2] sm:$0x7] }
  0x17   :  { %v67_v12 = vperm.slane %v65_v11, 0  ;;  %v68_v13 = vperm.slane %v65_v11, 1  ;;  %v69_v18 = vperm.slane %v65_v11, 2 }
  0x18   :  { %205 = vmatpush.bf16.msra.mxu0 %v293_v42 }
  0x19   :  { %219 = vmatpush.bf16.msra.mxu1 %v297_v43 }
  0x1a   :  { %233 = vmatpush.bf16.msra.mxu2 %v301_v44 }
  0x1c   :  { %206 = vmatpush.bf16.msra.mxu0 %v281_v51 }
  0x1d   :  { %220 = vmatpush.bf16.msra.mxu1 %v285_v52 }
  0x1e   :  { %234 = vmatpush.bf16.msra.mxu2 %v289_v53 }
  0x20   :  { %207 = vmatpush.bf16.msra.mxu0 %v269_v60 }
  0x21   :  { %221 = vmatpush.bf16.msra.mxu1 %v273_v61 }
  0x22   :  { %235 = vmatpush.bf16.msra.mxu2 %v277_v62 }
  0x24   :  { %208 = vmatpush.bf16.msra.mxu0 %v257_v5 }
  0x25   :  { %222 = vmatpush.bf16.msra.mxu1 %v261_v8 }
  0x26   :  { %236 = vmatpush.bf16.msra.mxu2 %v265_v9 }
  0x27   :  { %209 = vmatmul.bf16.vlgmr.msra.gmra.mxu0 %v32_v10 }
  0x28   :  { %223 = vmatmul.bf16.vlgmr.msra.gmra.mxu1 %v32_v10 }
  0x29   :  { %237 = vmatmul.bf16.vlgmr.msra.gmra.mxu2 %v32_v10 }
  0xa4   :  { %v210_v14 = vpop.f32.mrf.mxu0 }
  0xa5   :  { %v211_v15 = vadd.f32 %v210_v14, %v67_v12  ;;  %v224_v16 = vpop.f32.mrf.mxu1 }
  0xa6   :  { %v225_v17 = vadd.f32 %v224_v16, %v68_v13 }
  0xa7   :  { %243 = vst [vmem:[%s459_s3] sm:$0xff] %v211_v15 }
  0xa8   :  { %244 = vst [vmem:[%s459_s3 + $0x8] sm:$0xff] %v225_v17 }
  0xac   :  { %v238_v19 = vpop.f32.mrf.mxu2  ;;  %v212_v21 = vpop.f32.mrf.mxu0 }
  0xad   :  { %v239_v20 = vadd.f32 %v238_v19, %v69_v18  ;;  %v213_v22 = vadd.f32 %v212_v21, %v67_v12  ;;  %v226_v23 = vpop.f32.mrf.mxu1 }
  0xae   :  { %v227_v24 = vadd.f32 %v226_v23, %v68_v13 }
  0xaf   :  { %245 = vst [vmem:[%s459_s3 + $0x10] sm:$0xff] %v239_v20 }
  0xb0   :  { %246 = vst [vmem:[%s459_s3 + $0x18] sm:$0xff] %v213_v22 }
  0xb1   :  { %247 = vst [vmem:[%s459_s3 + $0x20] sm:$0xff] %v227_v24 }
  0xb4   :  { %v240_v25 = vpop.f32.mrf.mxu2 }
  0xb5   :  { %v241_v26 = vadd.f32 %v240_v25, %v69_v18 }
  0xb7   :  { %248 = vst [vmem:[%s459_s3 + $0x28] sm:$0xff] %v241_v26 }
  0xb8   :  { %253 = vsyncpa [#allocation3], 1 }

// kernel: gnn_layer_forward.7
= control target key start
LH: loop header
LB: loop body
LE: loop exit
PB: predicated region body
PF: predicated region fallthrough
CT: control target
= control target key end

     0   :  { %s1334_s4 = inlined_call_operand.vmem [shape: bf16[128,128], index: 4, kind: input, shape index: {}]   ;;  %s1335_s3 = inlined_call_operand.vmem [shape: bf16[128,128], index: 3, kind: input, shape index: {}]   ;;  %s1336_s5 = inlined_call_operand.vmem [shape: bf16[128,128], index: 5, kind: input, shape index: {}]   ;;  %s1337_s1 = inlined_call_operand.vmem [shape: f32[48,128], index: 1, kind: input, shape index: {}]   ;;  %s1338_s0 = inlined_call_operand.vmem [shape: f32[48,128], index: 0, kind: input, shape index: {}]   ;;  %s1339_s2 = inlined_call_operand.vmem [shape: f32[48,128], index: 2, kind: input, shape index: {}]   ;;  %s1340_s6 = inlined_call_operand.vmem [shape: f32[1,128], index: 6, kind: input, shape index: {}]   ;;  %s1341_s8 = inlined_call_operand.vmem [shape: f32[1,128], index: 8, kind: input, shape index: {}]   ;;  %s1342_s9 = inlined_call_operand.vmem [shape: f32[1,128], index: 9, kind: input, shape index: {}]   ;;  %s1343_s10 = inlined_call_operand.vmem [shape: f32[1,128], index: 10, kind: input, shape index: {}]   ;;  %s1344_s7 = inlined_call_operand.vmem [shape: bf16[128,128], index: 7, kind: input, shape index: {}]   ;;  %s1345_s11 = inlined_call_operand.vmem [shape: f32[48,128], index: 11, kind: output, shape index: {}]  }
   0x1   :  { %v889_v0 = vld [vmem:[%s1334_s4 + $0x38] sm:$0xff]  ;;  %v888_v3 = vld [vmem:[%s1334_s4 + $0x30] sm:$0xff]  ;;  %v887_v6 = vld [vmem:[%s1334_s4 + $0x28] sm:$0xff] }
   0x2   :  { %v881_v1 = vld [vmem:[%s1335_s3 + $0x38] sm:$0xff]  ;;  %136 = vmatpush.bf16.msra.mxu0 %v889_v0  ;;  %v880_v4 = vld [vmem:[%s1335_s3 + $0x30] sm:$0xff]  ;;  %v879_v7 = vld [vmem:[%s1335_s3 + $0x28] sm:$0xff] }
   0x3   :  { %v897_v2 = vld [vmem:[%s1336_s5 + $0x38] sm:$0xff]  ;;  %208 = vmatpush.bf16.msra.mxu1 %v881_v1  ;;  %v896_v5 = vld [vmem:[%s1336_s5 + $0x30] sm:$0xff]  ;;  %v895_v8 = vld [vmem:[%s1336_s5 + $0x28] sm:$0xff] }
   0x4   :  { %305 = vmatpush.bf16.msra.mxu2 %v897_v2  ;;  %v886_v9 = vld [vmem:[%s1334_s4 + $0x20] sm:$0xff]  ;;  %v885_v12 = vld [vmem:[%s1334_s4 + $0x18] sm:$0xff]  ;;  %v884_v15 = vld [vmem:[%s1334_s4 + $0x10] sm:$0xff] }
   0x5   :  { %v878_v10 = vld [vmem:[%s1335_s3 + $0x20] sm:$0xff]  ;;  %v877_v13 = vld [vmem:[%s1335_s3 + $0x18] sm:$0xff]  ;;  %v876_v16 = vld [vmem:[%s1335_s3 + $0x10] sm:$0xff] }
   0x6   :  { %137 = vmatpush.bf16.msra.mxu0 %v888_v3  ;;  %v894_v11 = vld [vmem:[%s1336_s5 + $0x20] sm:$0xff]  ;;  %v893_v14 = vld [vmem:[%s1336_s5 + $0x18] sm:$0xff]  ;;  %v892_v17 = vld [vmem:[%s1336_s5 + $0x10] sm:$0xff] }
   0x7   :  { %209 = vmatpush.bf16.msra.mxu1 %v880_v4  ;;  %v883_v18 = vld [vmem:[%s1334_s4 + $0x8] sm:$0xff]  ;;  %v882_v21 = vld [vmem:[%s1334_s4] sm:$0xff]  ;;  %v1081_v33 = vld [vmem:[%s1337_s1 + $0x10] sm:$0xff] }
   0x8   :  { %306 = vmatpush.bf16.msra.mxu2 %v896_v5  ;;  %v875_v19 = vld [vmem:[%s1335_s3 + $0x8] sm:$0xff]  ;;  %v874_v22 = vld [vmem:[%s1335_s3] sm:$0xff]  ;;  %v1086_v34 = vld [vmem:[%s1337_s1 + $0x18] sm:$0xff] }
   0x9   :  { %v891_v20 = vld [vmem:[%s1336_s5 + $0x8] sm:$0xff]  ;;  %v1054_v23 = vld [vmem:[%s1337_s1] sm:$0xff]  ;;  %v46_v35 = vld [vmem:[%s1338_s0 + $0x10] sm:$0xff]  ;;  %v70_v39 = vpack.c.bf16 %v1086_v34, %v1081_v33 }
   0xa   :  { %138 = vmatpush.bf16.msra.mxu0 %v887_v6  ;;  %v1059_v24 = vld [vmem:[%s1337_s1 + $0x8] sm:$0xff]  ;;  %v44_v25 = vld [vmem:[%s1338_s0] sm:$0xff]  ;;  %v47_v36 = vld [vmem:[%s1338_s0 + $0x18] sm:$0xff] }
   0xb   :  { %210 = vmatpush.bf16.msra.mxu1 %v879_v7  ;;  %v45_v26 = vld [vmem:[%s1338_s0 + $0x8] sm:$0xff]  ;;  %v890_v27 = vld [vmem:[%s1336_s5] sm:$0xff]  ;;  %v69_v30 = vpack.c.bf16 %v1059_v24, %v1054_v23  ;;  %v234_v37 = vld [vmem:[%s1339_s2 + $0x10] sm:$0xff]  ;;  %v51_v40 = vpack.c.bf16 %v47_v36, %v46_v35 }
   0xc   :  { %307 = vmatpush.bf16.msra.mxu2 %v895_v8  ;;  %v232_v28 = vld [vmem:[%s1339_s2] sm:$0xff]  ;;  %v233_v29 = vld [vmem:[%s1339_s2 + $0x8] sm:$0xff]  ;;  %v50_v31 = vpack.c.bf16 %v45_v26, %v44_v25  ;;  %v235_v38 = vld [vmem:[%s1339_s2 + $0x18] sm:$0xff] }
   0xd   :  { %v238_v32 = vpack.c.bf16 %v233_v29, %v232_v28  ;;  %v239_v41 = vpack.c.bf16 %v235_v38, %v234_v37  ;;  %v1105_v42 = vld [vmem:[%s1337_s1 + $0x20] sm:$0xff]  ;;  %v1110_v43 = vld [vmem:[%s1337_s1 + $0x28] sm:$0xff]  ;;  %v905_v59 = vld [vmem:[%s1344_s7 + $0x38] sm:$0xff] }
   0xe   :  { %139 = vmatpush.bf16.msra.mxu0 %v886_v9  ;;  %v48_v44 = vld [vmem:[%s1338_s0 + $0x20] sm:$0xff]  ;;  %v49_v45 = vld [vmem:[%s1338_s0 + $0x28] sm:$0xff]  ;;  %v71_v48 = vpack.c.bf16 %v1110_v43, %v1105_v42  ;;  %680 = vmatpush.bf16.msra.mxu3 %v905_v59  ;;  %v904_v62 = vld [vmem:[%s1344_s7 + $0x30] sm:$0xff] }
   0xf   :  { %211 = vmatpush.bf16.msra.mxu1 %v878_v10  ;;  %v236_v46 = vld [vmem:[%s1339_s2 + $0x20] sm:$0xff]  ;;  %v237_v47 = vld [vmem:[%s1339_s2 + $0x28] sm:$0xff]  ;;  %v52_v49 = vpack.c.bf16 %v49_v45, %v48_v44  ;;  %v901_v26 = vld [vmem:[%s1344_s7 + $0x18] sm:$0xff] }
  0x10   :  { %308 = vmatpush.bf16.msra.mxu2 %v894_v11  ;;  %v240_v50 = vpack.c.bf16 %v237_v47, %v236_v46  ;;  %v1129_v54 = vld [vmem:[%s1340_s6] ss:$0 sm:$0xff]  ;;  %v903_v6 = vld [vmem:[%s1344_s7 + $0x28] sm:$0xff]  ;;  %v900_v37 = vld [vmem:[%s1344_s7 + $0x10] sm:$0xff] }
  0x12   :  { %140 = vmatpush.bf16.msra.mxu0 %v885_v12  ;;  %681 = vmatpush.bf16.msra.mxu3 %v904_v62 }
  0x13   :  { %212 = vmatpush.bf16.msra.mxu1 %v877_v13  ;;  %v902_v13 = vld [vmem:[%s1344_s7 + $0x20] sm:$0xff] }
  0x14   :  { %309 = vmatpush.bf16.msra.mxu2 %v893_v14 }
  0x16   :  { %141 = vmatpush.bf16.msra.mxu0 %v884_v15  ;;  %682 = vmatpush.bf16.msra.mxu3 %v903_v6 }
  0x17   :  { %213 = vmatpush.bf16.msra.mxu1 %v876_v16 }
  0x18   :  { %310 = vmatpush.bf16.msra.mxu2 %v892_v17 }
  0x1a   :  { %142 = vmatpush.bf16.msra.mxu0 %v883_v18  ;;  %683 = vmatpush.bf16.msra.mxu3 %v902_v13 }
  0x1b   :  { %214 = vmatpush.bf16.msra.mxu1 %v875_v19 }
  0x1c   :  { %311 = vmatpush.bf16.msra.mxu2 %v891_v20 }
  0x1e   :  { %143 = vmatpush.bf16.msra.mxu0 %v882_v21  ;;  %684 = vmatpush.bf16.msra.mxu3 %v901_v26 }
  0x1f   :  { %215 = vmatpush.bf16.msra.mxu1 %v874_v22 }
  0x20   :  { %312 = vmatpush.bf16.msra.mxu2 %v890_v27 }
  0x21   :  { %144 = vmatmul.bf16.vlgmr.msra.gmra.mxu0 %v69_v30 }
  0x22   :  { %216 = vmatmul.bf16.vlgmr.msra.gmra.mxu1 %v50_v31  ;;  %685 = vmatpush.bf16.msra.mxu3 %v900_v37 }
  0x23   :  { %313 = vmatmul.bf16.vlgmr.msra.gmra.mxu2 %v238_v32 }
  0x31   :  { %149 = vmatmul.bf16.gmra.mxu0 %v70_v39 }
  0x32   :  { %221 = vmatmul.bf16.gmra.mxu1 %v51_v40 }
  0x33   :  { %318 = vmatmul.bf16.gmra.mxu2 %v239_v41 }
  0x41   :  { %154 = vmatmul.bf16.gmra.mxu0 %v71_v48 }
  0x42   :  { %226 = vmatmul.bf16.gmra.mxu1 %v52_v49 }
  0x43   :  { %323 = vmatmul.bf16.gmra.mxu2 %v240_v50 }
  0x9e   :  { %v145_v51 = vpop.f32.mrf.mxu0 }
  0x9f   :  { %v217_v52 = vpop.f32.mrf.mxu1 }
  0xa0   :  { %v218_v53 = vadd.f32 %v217_v52, %v145_v51 }
  0xa6   :  { %v314_v55 = vpop.f32.mrf.mxu2  ;;  %v147_v57 = vpop.f32.mrf.mxu0 }
  0xa7   :  { %v329_v56 = vadd.f32 %v314_v55, %v218_v53  ;;  %v219_v58 = vpop.f32.mrf.mxu1  ;;  %v899_v55 = vld [vmem:[%s1344_s7 + $0x8] sm:$0xff] }
  0xa8   :  { %v220_v0 = vadd.f32 %v219_v58, %v147_v57  ;;  %686 = vmatpush.bf16.msra.mxu3 %v899_v55 }
  0xa9   :  { %v1135_v60 = vadd.f32 %v1129_v54, %v329_v56 }
  0xab   :  { %v1138_v61 = vmul.f32 0.70710677, %v1135_v60 }
  0xad   :  { %v357_v63 = vmul.f32 %v1138_v61, %v1138_v61 }
  0xae   :  { %v316_v1 = vpop.f32.mrf.mxu2  ;;  %v150_v4 = vpop.f32.mrf.mxu0 }
  0xaf   :  { %v1145_v2 = vmin.f32 %v357_v63, 16.0  ;;  %v330_v3 = vadd.f32 %v316_v1, %v220_v0  ;;  %v222_v5 = vpop.f32.mrf.mxu1 }
  0xb0   :  { %v223_v12 = vadd.f32 %v222_v5, %v150_v4  ;;  %v898_v5 = vld [vmem:[%s1344_s7] sm:$0xff] }
  0xb1   :  { %v359_v7 = vmul.f32 2.1237322e-06, %v1145_v2  ;;  %v1152_v8 = vadd.f32 %v1129_v54, %v330_v3  ;;  %v370_v9 = vmul.f32 3.8918573e-05, %v1145_v2  ;;  %687 = vmatpush.bf16.msra.mxu3 %v898_v5 }
  0xb3   :  { %v360_v10 = vadd.f32 0.00028619796, %v359_v7  ;;  %v1156_v11 = vmul.f32 0.70710677, %v1152_v8  ;;  %v371_v14 = vadd.f32 0.001143296, %v370_v9 }
  0xb5   :  { %v361_v15 = vmul.f32 %v360_v10, %v1145_v2  ;;  %v397_v16 = vmul.f32 %v1156_v11, %v1156_v11  ;;  %v372_v18 = vmul.f32 %v371_v14, %v1145_v2 }
  0xb6   :  { %v319_v17 = vpop.f32.mrf.mxu2  ;;  %v152_v22 = vpop.f32.mrf.mxu0 }
  0xb7   :  { %v362_v19 = vadd.f32 0.0036580483, %v361_v15  ;;  %v1165_v20 = vmin.f32 %v397_v16, 16.0  ;;  %v331_v21 = vadd.f32 %v319_v17, %v223_v12  ;;  %v224_v25 = vpop.f32.mrf.mxu1  ;;  %v373_v27 = vadd.f32 0.014752088, %v372_v18 }
  0xb8   :  { %v225_v40 = vadd.f32 %v224_v25, %v152_v22 }
  0xb9   :  { %v399_v28 = vmul.f32 2.1237322e-06, %v1165_v20  ;;  %v1172_v29 = vadd.f32 %v1129_v54, %v331_v21  ;;  %v410_v30 = vmul.f32 3.8918573e-05, %v1165_v20  ;;  %v374_v31 = vmul.f32 %v373_v27, %v1145_v2 }
  0xba   :  { %v363_v32 = vmul.f32 %v362_v19, %v1145_v2 }
  0xbb   :  { %v400_v35 = vadd.f32 0.00028619796, %v399_v28  ;;  %v1178_v36 = vmul.f32 0.70710677, %v1172_v29  ;;  %v375_v38 = vadd.f32 0.112945676, %v374_v31 }
  0xbc   :  { %v411_v41 = vadd.f32 0.001143296, %v410_v30  ;;  %v364_v47 = vadd.f32 0.05243302, %v363_v32 }
  0xbd   :  { %v401_v39 = vmul.f32 %v400_v35, %v1165_v20  ;;  %v437_v44 = vmul.f32 %v1178_v36, %v1178_v36  ;;  %v376_v46 = vmul.f32 %v375_v38, %v1145_v2 }
  0xbe   :  { %v321_v45 = vpop.f32.mrf.mxu2  ;;  %v412_v49 = vmul.f32 %v411_v41, %v1165_v20  ;;  %v155_v52 = vpop.f32.mrf.mxu0  ;;  %v365_v63 = vmul.f32 %v364_v47, %v1145_v2 }
  0xbf   :  { %v332_v48 = vadd.f32 %v321_v45, %v225_v40  ;;  %v402_v50 = vadd.f32 0.0036580483, %v401_v39  ;;  %v1188_v51 = vmin.f32 %v437_v44, 16.0  ;;  %v227_v53 = vpop.f32.mrf.mxu1  ;;  %v377_v56 = vadd.f32 0.4994258, %v376_v46 }
  0xc0   :  { %v413_v58 = vadd.f32 0.014752088, %v412_v49  ;;  %v228_v0 = vadd.f32 %v227_v53, %v155_v52  ;;  %v366_v13 = vadd.f32 0.18741608, %v365_v63 }
  0xc1   :  { %v1194_v57 = vadd.f32 %v1129_v54, %v332_v48  ;;  %v378_v59 = vmul.f32 %v377_v56, %v1145_v2  ;;  %v450_v62 = vmul.f32 3.8918573e-05, %v1188_v51  ;;  %v403_v3 = vmul.f32 %v402_v50, %v1165_v20 }
  0xc2   :  { %v414_v1 = vmul.f32 %v413_v58, %v1165_v20  ;;  %v439_v14 = vmul.f32 2.1237322e-06, %v1188_v51  ;;  %v367_v27 = vmul.f32 %v366_v13, %v1145_v2 }
  0xc3   :  { %v1202_v4 = vmul.f32 0.70710677, %v1194_v57  ;;  %v379_v6 = vadd.f32 1.0, %v378_v59  ;;  %v451_v12 = vadd.f32 0.001143296, %v450_v62 }
  0xc4   :  { %v415_v7 = vadd.f32 0.112945676, %v414_v1  ;;  %v404_v16 = vadd.f32 0.05243302, %v403_v3  ;;  %v440_v28 = vadd.f32 0.00028619796, %v439_v14 }
  0xc5   :  { %v477_v9 = vmul.f32 %v1202_v4, %v1202_v4  ;;  %910 = vrcp.f32 %v379_v6  ;;  %v452_v26 = vmul.f32 %v451_v12, %v1188_v51  ;;  %v368_v48 = vadd.f32 1.1283791, %v367_v27 }
  0xc6   :  { %v324_v10 = vpop.f32.mrf.mxu2  ;;  %v416_v17 = vmul.f32 %v415_v7, %v1165_v20  ;;  %v157_v21 = vpop.f32.mrf.mxu0  ;;  %v405_v31 = vmul.f32 %v404_v16, %v1165_v20  ;;  %v441_v2 = vmul.f32 %v440_v28, %v1188_v51  ;;  %vm385_vm1 = vweird.f32 %v379_v6 }
  0xc7   :  { %v333_v15 = vadd.f32 %v324_v10, %v228_v0  ;;  %v1211_v18 = vmin.f32 %v477_v9, 16.0  ;;  %v229_v22 = vpop.f32.mrf.mxu1  ;;  %v453_v37 = vadd.f32 0.014752088, %v452_v26  ;;  %v391_v56 = vand.u32 2147483648, %v379_v6 }
  0xc8   :  { %v417_v25 = vadd.f32 0.4994258, %v416_v17  ;;  %v230_v39 = vadd.f32 %v229_v22, %v157_v21  ;;  %v406_v49 = vadd.f32 0.18741608, %v405_v31  ;;  %v442_v62 = vadd.f32 0.0036580483, %v441_v2 }
  0xc9   :  { %v1214_v19 = vadd.f32 %v1129_v54, %v333_v15  ;;  %v479_v38 = vmul.f32 2.1237322e-06, %v1211_v18  ;;  %v454_v45 = vmul.f32 %v453_v37, %v1188_v51  ;;  %v490_v59 = vmul.f32 3.8918573e-05, %v1211_v18 }
  0xca   :  { %v418_v35 = vmul.f32 %v417_v25, %v1165_v20  ;;  %v389_v1 = vand.u32 2147483647, %v379_v6  ;;  %v407_v5 = vmul.f32 %v406_v49, %v1165_v20  ;;  %v392_v13 = vor.u32 1.1754944e-38, %v391_v56 }
  0xcb   :  { %v911_v30 = vpop.eup %910  ;;  %v1220_v32 = vmul.f32 0.70710677, %v1214_v19  ;;  %v480_v52 = vadd.f32 0.00028619796, %v479_v38  ;;  %v455_v58 = vadd.f32 0.112945676, %v454_v45  ;;  %v369_v15 = vmul.f32 %v368_v48, %v1138_v61 }
  0xcc   :  { %v381_v40 = vmul.f32 %v911_v30, %v379_v6  ;;  %v1224_v44 = vadd.f32 1.0, %v418_v35  ;;  %vm386_vm0 = vweird.f32 %v911_v30  ;;  %v491_v14 = vadd.f32 0.001143296, %v490_v59 }
  0xcd   :  { %v517_v50 = vmul.f32 %v1220_v32, %v1220_v32  ;;  %vm387_vm2 = vmor %vm385_vm1, %vm386_vm0  ;;  %v456_v9 = vmul.f32 %v455_v58, %v1188_v51  ;;  %v443_v6 = vmul.f32 %v442_v62, %v1188_v51  ;;  %vm390_vm3 = vcmp.eq.f32.partialorder %v389_v1, 8.507059e+37 }
  0xce   :  { %v326_v41 = vpop.f32.mrf.mxu2  ;;  %v382_v47 = vsub.f32 1.0, %v381_v40  ;;  %912 = vrcp.f32 %v1224_v44  ;;  %v492_v22 = vmul.f32 %v491_v14, %v1211_v18  ;;  %v408_v25 = vadd.f32 1.1283791, %v407_v5 }
  0xcf   :  { %v334_v46 = vadd.f32 %v326_v41, %v230_v39  ;;  %v1238_v3 = vmin.f32 %v517_v50, 16.0  ;;  %v457_v21 = vadd.f32 0.4994258, %v456_v9  ;;  %v431_v28 = vand.u32 2147483648, %v1224_v44 }
  0xd0   :  { %v383_v55 = vmul.f32 %v911_v30, %v382_v47  ;;  %v493_v31 = vadd.f32 0.014752088, %v492_v22  ;;  %v429_v39 = vand.u32 2147483647, %v1224_v44  ;;  %vm425_vm5 = vweird.f32 %v1224_v44 }
  0xd1   :  { %v1232_v53 = vadd.f32 %v1129_v54, %v334_v46  ;;  %v481_v54 = vmul.f32 %v480_v52, %v1211_v18  ;;  %v519_v20 = vmul.f32 2.1237322e-06, %v1238_v3  ;;  %v458_v61 = vmul.f32 %v457_v21, %v1188_v51 }
  0xd2   :  { %v384_v0 = vadd.f32 %v911_v30, %v383_v55  ;;  %v530_v35 = vmul.f32 3.8918573e-05, %v1238_v3  ;;  %v494_v45 = vmul.f32 %v493_v31, %v1211_v18  ;;  %v444_v46 = vadd.f32 0.05243302, %v443_v6 }
  0xd3   :  { %v1236_v63 = vmul.f32 0.70710677, %v1232_v53  ;;  %v482_v26 = vadd.f32 0.0036580483, %v481_v54  ;;  %v520_v40 = vadd.f32 0.00028619796, %v519_v20  ;;  %v409_v48 = vmul.f32 %v408_v25, %v1156_v11 }
  0xd4   :  { %v388_v7 = vsel %vm387_vm2, %v911_v30, %v384_v0  ;;  %v913_v10 = vpop.eup %912  ;;  %v1256_v41 = vadd.f32 1.0, %v458_v61  ;;  %v531_v2 = vadd.f32 0.001143296, %v530_v35  ;;  %v432_v50 = vor.u32 1.1754944e-38, %v431_v28 }
  0xd5   :  { %v557_v12 = vmul.f32 %v1236_v63, %v1236_v63  ;;  %v421_v16 = vmul.f32 %v913_v10, %v1224_v44  ;;  %v393_v17 = vsel %vm390_vm3, %v392_v13, %v388_v7  ;;  %vm426_vm4 = vweird.f32 %v913_v10 }
  0xd6   :  { %v394_v37 = vmul.f32 %v393_v17, %v369_v15  ;;  %vm427_vm6 = vmor %vm425_vm5, %vm426_vm4  ;;  %914 = vrcp.f32 %v1256_v41  ;;  %v483_v52 = vmul.f32 %v482_v26, %v1211_v18  ;;  %vm430_vm7 = vcmp.eq.f32.partialorder %v429_v39, 8.507059e+37 }
  0xd7   :  { %v422_v27 = vsub.f32 1.0, %v421_v16  ;;  %v1251_v30 = vmin.f32 %v557_v12, 16.0  ;;  %v521_v58 = vmul.f32 %v520_v40, %v1238_v3  ;;  %v495_v62 = vadd.f32 0.112945676, %v494_v45 }
  0xd8   :  { %v836_v55 = vclamps-f32 %v394_v37, 1.0  ;;  %v532_v0 = vmul.f32 %v531_v2, %v1238_v3  ;;  %v445_v44 = vmul.f32 %v444_v46, %v1188_v51  ;;  %v345_v9 = vmul.f32 0.5, %v1135_v60 }
  0xd9   :  { %v423_v38 = vmul.f32 %v913_v10, %v422_v27  ;;  %v559_v49 = vmul.f32 2.1237322e-06, %v1251_v30  ;;  %v496_v5 = vmul.f32 %v495_v62, %v1211_v18  ;;  %v570_v7 = vmul.f32 3.8918573e-05, %v1251_v30 }
  0xda   :  { %v533_v54 = vadd.f32 0.014752088, %v532_v0  ;;  %v484_v12 = vadd.f32 0.05243302, %v483_v52  ;;  %v597_v13 = vadd.f32 1.0, %v836_v55  ;;  %v346_v17 = vmul.f32 0.5, %v1152_v8 }
  0xdb   :  { %v424_v47 = vadd.f32 %v913_v10, %v423_v38  ;;  %v560_v1 = vadd.f32 0.00028619796, %v559_v49  ;;  %v522_v15 = vadd.f32 0.0036580483, %v521_v58  ;;  %v497_v6 = vadd.f32 0.4994258, %v496_v5 }
  0xdc   :  { %v915_v14 = vpop.eup %914  ;;  %v534_v16 = vmul.f32 %v533_v54, %v1238_v3  ;;  %v571_v20 = vadd.f32 0.001143296, %v570_v7  ;;  %v446_v21 = vadd.f32 0.18741608, %v445_v44  ;;  %v485_v61 = vmul.f32 %v484_v12, %v1211_v18 }
  0xdd   :  { %v428_v56 = vsel %vm427_vm6, %v913_v10, %v424_v47  ;;  %v461_v25 = vmul.f32 %v915_v14, %v1256_v41  ;;  %v561_v26 = vmul.f32 %v560_v1, %v1251_v30  ;;  %v498_v27 = vmul.f32 %v497_v6, %v1211_v18 }
  0xde   :  { %v433_v59 = vsel %vm430_vm7, %v432_v50, %v428_v56  ;;  %v535_v60 = vadd.f32 0.112945676, %v534_v16  ;;  %v572_v28 = vmul.f32 %v571_v20, %v1251_v30  ;;  %v603_v31 = vmul.f32 %v597_v13, %v345_v9 }
  0xdf   :  { %v434_v11 = vmul.f32 %v433_v59, %v409_v48  ;;  %v462_v37 = vsub.f32 1.0, %v461_v25  ;;  %v523_v38 = vmul.f32 %v522_v15, %v1238_v3  ;;  %v499_v39 = vadd.f32 1.0, %v498_v27 }
  0xe0   :  { %v536_v8 = vmul.f32 %v535_v60, %v1238_v3  ;;  %v573_v40 = vadd.f32 0.014752088, %v572_v28  ;;  %v447_v46 = vmul.f32 %v446_v21, %v1188_v51  ;;  %v562_v47 = vadd.f32 0.0036580483, %v561_v26 }
  0xe1   :  { %v837_v10 = vclamps-f32 %v434_v11, 1.0  ;;  %v463_v2 = vmul.f32 %v915_v14, %v462_v37  ;;  %916 = vrcp.f32 %v499_v39  ;;  %vm466_vm8 = vweird.f32 %v915_v14 }
  0xe2   :  { %v537_v49 = vadd.f32 0.4994258, %v536_v8  ;;  %v574_v50 = vmul.f32 %v573_v40, %v1251_v30  ;;  %v486_v52 = vadd.f32 0.18741608, %v485_v61  ;;  %v524_v55 = vadd.f32 0.05243302, %v523_v38 }
  0xe3   :  { %v598_v22 = vadd.f32 1.0, %v837_v10  ;;  %v464_v48 = vadd.f32 %v915_v14, %v463_v2  ;;  %v471_v56 = vand.u32 2147483648, %v1256_v41  ;;  %vm465_vm9 = vweird.f32 %v1256_v41 }
  0xe4   :  { %v469_v58 = vand.u32 2147483647, %v1256_v41  ;;  %v538_v59 = vmul.f32 %v537_v49, %v1238_v3  ;;  %v575_v62 = vadd.f32 0.112945676, %v574_v50  ;;  %v563_v51 = vmul.f32 %v562_v47, %v1251_v30  ;;  %vm467_vm10 = vmor %vm465_vm9, %vm466_vm8 }
  0xe5   :  { %v604_v35 = vmul.f32 %v598_v22, %v346_v17  ;;  %v448_v0 = vadd.f32 1.1283791, %v447_v46  ;;  %v468_v44 = vsel %vm467_vm10, %v915_v14, %v464_v48  ;;  %v487_v54 = vmul.f32 %v486_v52, %v1211_v18 }
  0xe6   :  { %v539_v11 = vadd.f32 1.0, %v538_v59  ;;  %v576_v1 = vmul.f32 %v575_v62, %v1251_v30  ;;  %v525_v7 = vmul.f32 %v524_v55, %v1238_v3  ;;  %v472_v9 = vor.u32 1.1754944e-38, %v471_v56 }
  0xe7   :  { %v609_v45 = vpack.c.bf16 %v604_v35, %v603_v31  ;;  %v917_v5 = vpop.eup %916  ;;  %vm470_vm11 = vcmp.eq.f32.partialorder %v469_v58, 8.507059e+37  ;;  %v564_v41 = vadd.f32 0.05243302, %v563_v51  ;;  %v449_v15 = vmul.f32 %v448_v0, %v1178_v36 }
  0xe8   :  { %v501_v12 = vmul.f32 %v917_v5, %v499_v39  ;;  %918 = vrcp.f32 %v539_v11  ;;  %v473_v10 = vsel %vm470_vm11, %v472_v9, %v468_v44  ;;  %v577_v13 = vadd.f32 0.4994258, %v576_v1 }
  0xe9   :  { %688 = vmatmul.bf16.vlgmr.msra.gmra.mxu3 %v609_v45  ;;  %v488_v16 = vadd.f32 1.1283791, %v487_v54  ;;  %v526_v14 = vadd.f32 0.18741608, %v525_v7  ;;  %v511_v20 = vand.u32 2147483648, %v499_v39  ;;  %v474_v21 = vmul.f32 %v473_v10, %v449_v15 }
  0xea   :  { %v502_v6 = vsub.f32 1.0, %v501_v12  ;;  %v578_v17 = vmul.f32 %v577_v13, %v1251_v30  ;;  %vm506_vm12 = vweird.f32 %v917_v5  ;;  %v509_v18 = vand.u32 2147483647, %v499_v39 }
  0xeb   :  { %v565_v25 = vmul.f32 %v564_v41, %v1251_v30  ;;  %vm505_vm13 = vweird.f32 %v499_v39  ;;  %v527_v28 = vmul.f32 %v526_v14, %v1238_v3  ;;  %v512_v36 = vor.u32 1.1754944e-38, %v511_v20 }
  0xec   :  { %v503_v22 = vmul.f32 %v917_v5, %v502_v6  ;;  %v579_v26 = vadd.f32 1.0, %v578_v17  ;;  %vm507_vm14 = vmor %vm505_vm13, %vm506_vm12  ;;  %v489_v31 = vmul.f32 %v488_v16, %v1202_v4  ;;  %v838_v35 = vclamps-f32 %v474_v21, 1.0 }
  0xed   :  { %vm510_vm15 = vcmp.eq.f32.partialorder %v509_v18, 8.507059e+37  ;;  %v566_v38 = vadd.f32 0.18741608, %v565_v25  ;;  %v551_v2 = vand.u32 2147483648, %v539_v11  ;;  %v528_v46 = vadd.f32 1.1283791, %v527_v28 }
  0xee   :  { %v919_v27 = vpop.eup %918  ;;  %v504_v60 = vadd.f32 %v917_v5, %v503_v22  ;;  %920 = vrcp.f32 %v579_v26  ;;  %v549_v39 = vand.u32 2147483647, %v539_v11  ;;  %v599_v3 = vadd.f32 1.0, %v838_v35 }
  0xef   :  { %v541_v61 = vmul.f32 %v919_v27, %v539_v11  ;;  %vm546_vm0 = vweird.f32 %v919_v27  ;;  %v347_v50 = vmul.f32 0.5, %v1172_v29  ;;  %v567_v52 = vmul.f32 %v566_v38, %v1251_v30 }
  0xf0   :  { %v508_v37 = vsel %vm507_vm14, %v917_v5, %v504_v60  ;;  %vm545_vm1 = vweird.f32 %v539_v11  ;;  %v348_v55 = vmul.f32 0.5, %v1194_v57  ;;  %v552_v58 = vor.u32 1.1754944e-38, %v551_v2 }
  0xf1   :  { %v513_v8 = vsel %vm510_vm15, %v512_v36, %v508_v37  ;;  %v542_v40 = vsub.f32 1.0, %v541_v61  ;;  %vm547_vm2 = vmor %vm545_vm1, %vm546_vm0  ;;  %v529_v62 = vmul.f32 %v528_v46, %v1220_v32  ;;  %vm550_vm3 = vcmp.eq.f32.partialorder %v549_v39, 8.507059e+37 }
  0xf2   :  { %v514_v45 = vmul.f32 %v513_v8, %v489_v31  ;;  %v605_v0 = vmul.f32 %v599_v3, %v347_v50  ;;  %v568_v54 = vadd.f32 1.1283791, %v567_v52  ;;  %v589_v29 = vand.u32 2147483647, %v579_v26 }
  0xf3   :  { %v543_v47 = vmul.f32 %v919_v27, %v542_v40  ;;  %v591_v7 = vand.u32 2147483648, %v579_v26  ;;  %vm585_vm5 = vweird.f32 %v579_v26  ;;  %v349_v14 = vmul.f32 0.5, %v1214_v19  ;;  %v909_v19 = vld [vmem:[%s1343_s10] ss:$0 sm:$0xff] }
  0xf4   :  { %v839_v48 = vclamps-f32 %v514_v45, 1.0  ;;  %v921_v49 = vpop.eup %920  ;;  %v569_v32 = vmul.f32 %v568_v54, %v1236_v63  ;;  %vm590_vm7 = vcmp.eq.f32.partialorder %v589_v29, 8.507059e+37  ;;  %v350_v20 = vmul.f32 0.5, %v1232_v53  ;;  %v907_v63 = vld [vmem:[%s1341_s8] ss:$0 sm:$0xff] }
  0xf5   :  { %v544_v4 = vadd.f32 %v919_v27, %v543_v47  ;;  %v581_v59 = vmul.f32 %v921_v49, %v579_v26  ;;  %vm586_vm4 = vweird.f32 %v921_v49  ;;  %v592_v12 = vor.u32 1.1754944e-38, %v591_v7 }
  0xf6   :  { %v600_v56 = vadd.f32 1.0, %v839_v48  ;;  %vm587_vm6 = vmor %vm585_vm5, %vm586_vm4 }
  0xf7   :  { %v548_v51 = vsel %vm547_vm2, %v919_v27, %v544_v4  ;;  %v582_v5 = vsub.f32 1.0, %v581_v59  ;;  %v908_v27 = vld [vmem:[%s1342_s9] ss:$0 sm:$0xff] }
  0xf8   :  { %v606_v44 = vmul.f32 %v600_v56, %v348_v55  ;;  %v553_v1 = vsel %vm550_vm3, %v552_v58, %v548_v51 }
  0xf9   :  { %v554_v9 = vmul.f32 %v553_v1, %v529_v62  ;;  %v583_v11 = vmul.f32 %v921_v49, %v582_v5 }
  0xfa   :  { %v610_v30 = vpack.c.bf16 %v606_v44, %v605_v0 }
  0xfb   :  { %v584_v57 = vadd.f32 %v921_v49, %v583_v11  ;;  %v840_v41 = vclamps-f32 %v554_v9, 1.0 }
  0xfc   :  { %693 = vmatmul.bf16.gmra.mxu3 %v610_v30 }
  0xfd   :  { %v588_v10 = vsel %vm587_vm6, %v921_v49, %v584_v57  ;;  %v601_v16 = vadd.f32 1.0, %v840_v41 }
  0xfe   :  { %v593_v13 = vsel %vm590_vm7, %v592_v12, %v588_v10 }
  0xff   :  { %v594_v15 = vmul.f32 %v593_v13, %v569_v32  ;;  %v607_v21 = vmul.f32 %v601_v16, %v349_v14 }
 0x101   :  { %v841_v6 = vclamps-f32 %v594_v15, 1.0 }
 0x103   :  { %v602_v17 = vadd.f32 1.0, %v841_v6 }
 0x105   :  { %v608_v22 = vmul.f32 %v602_v17, %v350_v20 }
 0x107   :  { %v611_v18 = vpack.c.bf16 %v608_v22, %v607_v21 }
 0x10c   :  { %698 = vmatmul.bf16.gmra.mxu3 %v611_v18 }
 0x16c   :  { %v689_v25 = vpop.f32.mrf.mxu3 }
 0x16d   :  { %v690_v26 = vadd.f32 %v907_v63, %v689_v25 }
 0x16f   :  { %v704_v60 = vadd.f32 %v690_v26, %v1054_v23 }
 0x171   :  { %v714_v53 = vmul.f32 %v908_v27, %v704_v60 }
 0x173   :  { %v724_v28 = vadd.f32 %v909_v19, %v714_v53 }
 0x174   :  { %v691_v36 = vpop.f32.mrf.mxu3 }
 0x175   :  { %730 = vst [vmem:[%s1345_s11] sm:$0xff] %v724_v28  ;;  %v692_v61 = vadd.f32 %v907_v63, %v691_v36 }
 0x177   :  { %v705_v31 = vadd.f32 %v692_v61, %v1059_v24 }
 0x179   :  { %v715_v35 = vmul.f32 %v908_v27, %v705_v31 }
 0x17b   :  { %v725_v37 = vadd.f32 %v909_v19, %v715_v35 }
 0x17d   :  { %731 = vst [vmem:[%s1345_s11 + $0x8] sm:$0xff] %v725_v37 }
 0x17f   :  { %v694_v23 = vpop.f32.mrf.mxu3 }
 0x180   :  { %v695_v38 = vadd.f32 %v907_v63, %v694_v23 }
 0x182   :  { %v706_v8 = vadd.f32 %v695_v38, %v1081_v33 }
 0x184   :  { %v716_v40 = vmul.f32 %v908_v27, %v706_v8 }
 0x186   :  { %v726_v45 = vadd.f32 %v909_v19, %v716_v40 }
 0x187   :  { %v696_v2 = vpop.f32.mrf.mxu3 }
 0x188   :  { %732 = vst [vmem:[%s1345_s11 + $0x10] sm:$0xff] %v726_v45  ;;  %v697_v46 = vadd.f32 %v907_v63, %v696_v2 }
 0x18a   :  { %v707_v24 = vadd.f32 %v697_v46, %v1086_v34 }
 0x18c   :  { %v717_v47 = vmul.f32 %v908_v27, %v707_v24 }
 0x18e   :  { %v727_v39 = vadd.f32 %v909_v19, %v717_v47 }
 0x18f   :  { %v699_v48 = vpop.f32.mrf.mxu3 }
 0x190   :  { %733 = vst [vmem:[%s1345_s11 + $0x18] sm:$0xff] %v727_v39  ;;  %v700_v3 = vadd.f32 %v907_v63, %v699_v48 }
 0x192   :  { %v708_v33 = vadd.f32 %v700_v3, %v1105_v42 }
 0x194   :  { %v718_v49 = vmul.f32 %v908_v27, %v708_v33 }
 0x196   :  { %v728_v50 = vadd.f32 %v909_v19, %v718_v49 }
 0x197   :  { %v701_v52 = vpop.f32.mrf.mxu3 }
 0x198   :  { %734 = vst [vmem:[%s1345_s11 + $0x20] sm:$0xff] %v728_v50  ;;  %v702_v4 = vadd.f32 %v907_v63, %v701_v52 }
 0x19a   :  { %v709_v34 = vadd.f32 %v702_v4, %v1110_v43 }
 0x19c   :  { %v719_v55 = vmul.f32 %v908_v27, %v709_v34 }
 0x19e   :  { %v729_v56 = vadd.f32 %v909_v19, %v719_v55 }
 0x1a0   :  { %735 = vst [vmem:[%s1345_s11 + $0x28] sm:$0xff] %v729_v56 }

// kernel: gnn_layer_forward.6
= control target key start
LH: loop header
LB: loop body
LE: loop exit
PB: predicated region body
PF: predicated region fallthrough
CT: control target
= control target key end

     0   :  { %v35_v6 = vlaneseq  ;;  %v426_v11 = vmov 0.0   ;;  %s582_s0 = inlined_call_operand.vmem [shape: f32[16,128], index: 0, kind: input, shape index: {}]   ;;  %s583_s1 = inlined_call_operand.vmem [shape: f32[16,128], index: 1, kind: input, shape index: {}]   ;;  %s584_s2 = inlined_call_operand.vmem [shape: f32[1,128], index: 2, kind: input, shape index: {}]   ;;  %s585_s3 = inlined_call_operand.vmem [shape: f32[1,128], index: 3, kind: input, shape index: {}]   ;;  %s586_s5 = inlined_call_operand.vmem [shape: f32[1,128], index: 5, kind: input, shape index: {}]   ;;  %s587_s4 = inlined_call_operand.vmem [shape: bf16[128,128], index: 4, kind: input, shape index: {}]   ;;  %s588_s6 = inlined_call_operand.vmem [shape: bf16[128,128], index: 6, kind: input, shape index: {}]   ;;  %s589_s7 = inlined_call_operand.vmem [shape: f32[1,128], index: 7, kind: input, shape index: {}]   ;;  %s590_s8 = inlined_call_operand.vmem [shape: f32[1,128], index: 8, kind: input, shape index: {}]   ;;  %s591_s9 = inlined_call_operand.vmem [shape: f32[1,128], index: 9, kind: input, shape index: {}]   ;;  %s592_s10 = inlined_call_operand.vmem [shape: f32[16,128], index: 10, kind: output, shape index: {}]  }
   0x1   :  { %v40_v0 = vld [vmem:[%s582_s0] sm:$0xff]  ;;  %v41_v3 = vld [vmem:[%s582_s0 + $0x8] sm:$0xff]  ;;  %v402_v20 = vld [vmem:[%s587_s4 + $0x38] sm:$0xff] }
   0x2   :  { %v42_v1 = vld [vmem:[%s583_s1] sm:$0xff]  ;;  %v43_v4 = vld [vmem:[%s583_s1 + $0x8] sm:$0xff]  ;;  %v36_v7 = vand.u32 127, %v35_v6  ;;  %169 = vmatpush.bf16.msra.mxu0 %v402_v20  ;;  %v401_v21 = vld [vmem:[%s587_s4 + $0x30] sm:$0xff] }
   0x3   :  { %v44_v2 = vadd.f32 %v42_v1, %v40_v0  ;;  %v45_v5 = vadd.f32 %v43_v4, %v41_v3  ;;  %v400_v22 = vld [vmem:[%s587_s4 + $0x28] sm:$0xff]  ;;  %v399_v23 = vld [vmem:[%s587_s4 + $0x20] sm:$0xff]  ;;  %v398_v24 = vld [vmem:[%s587_s4 + $0x18] sm:$0xff] }
   0x4   :  { %vm37_vm0 = vcmp.lt.s32.totalorder %v36_v7, 32  ;;  %v397_v25 = vld [vmem:[%s587_s4 + $0x10] sm:$0xff]  ;;  %v396_v26 = vld [vmem:[%s587_s4 + $0x8] sm:$0xff]  ;;  %v395_v28 = vld [vmem:[%s587_s4] sm:$0xff] }
   0x5   :  { %48 = vadd.xlane.f32.xlu0 %v44_v2  ;;  %v496_v12 = vsel %vm37_vm0, 1.0, %v426_v11  ;;  %v410_v31 = vld [vmem:[%s588_s6 + $0x38] sm:$0xff]  ;;  %v409_v34 = vld [vmem:[%s588_s6 + $0x30] sm:$0xff]  ;;  %v408_v38 = vld [vmem:[%s588_s6 + $0x28] sm:$0xff] }
   0x6   :  { %170 = vmatpush.bf16.msra.mxu0 %v401_v21  ;;  %254 = vmatpush.bf16.msra.mxu1 %v410_v31  ;;  %v407_v41 = vld [vmem:[%s588_s6 + $0x20] sm:$0xff]  ;;  %v406_v61 = vld [vmem:[%s588_s6 + $0x18] sm:$0xff]  ;;  %v405_v62 = vld [vmem:[%s588_s6 + $0x10] sm:$0xff] }
   0x7   :  { %v412_v51 = vld [vmem:[%s584_s2] ss:$0 sm:$0xff]  ;;  %v404_v63 = vld [vmem:[%s588_s6 + $0x8] sm:$0xff] }
   0x8   :  { %v413_v56 = vld [vmem:[%s585_s3] ss:$0 sm:$0xff] }
   0x9   :  { %v403_v0 = vld [vmem:[%s588_s6] sm:$0xff] }
   0xa   :  { %171 = vmatpush.bf16.msra.mxu0 %v400_v22  ;;  %255 = vmatpush.bf16.msra.mxu1 %v409_v34 }
   0xd   :  { %50 = vadd.xlane.f32.xlu0 %v45_v5 }
   0xe   :  { %172 = vmatpush.bf16.msra.mxu0 %v399_v23  ;;  %256 = vmatpush.bf16.msra.mxu1 %v408_v38 }
  0x12   :  { %173 = vmatpush.bf16.msra.mxu0 %v398_v24  ;;  %257 = vmatpush.bf16.msra.mxu1 %v407_v41 }
  0x16   :  { %174 = vmatpush.bf16.msra.mxu0 %v397_v25  ;;  %258 = vmatpush.bf16.msra.mxu1 %v406_v61 }
  0x1a   :  { %175 = vmatpush.bf16.msra.mxu0 %v396_v26  ;;  %259 = vmatpush.bf16.msra.mxu1 %v405_v62 }
  0x1e   :  { %176 = vmatpush.bf16.msra.mxu0 %v395_v28  ;;  %260 = vmatpush.bf16.msra.mxu1 %v404_v63 }
  0x22   :  { %261 = vmatpush.bf16.msra.mxu1 %v403_v0 }
  0x78   :  { %v49_v8 = vpop.xlane.xlu0 %48 }
  0x79   :  { %v52_v9 = vmul.f32 0.03125, %v49_v8 }
  0x7b   :  { %v494_v10 = vsub.f32 %v44_v2, %v52_v9  ;;  %v414_v2 = vld [vmem:[%s586_s5] ss:$0 sm:$0xff] }
  0x7c   :  { %v415_v9 = vld [vmem:[%s589_s7] ss:$0 sm:$0xff] }
  0x7d   :  { %v56_v13 = vmul.f32 %v494_v10, %v494_v10 }
  0x7f   :  { %v58_v14 = vmul.f32 %v496_v12, %v56_v13 }
  0x80   :  { %v51_v15 = vpop.xlane.xlu0 %50 }
  0x81   :  { %v53_v16 = vmul.f32 0.03125, %v51_v15  ;;  %60 = vadd.xlane.f32.xlu1 %v58_v14 }
  0x83   :  { %v501_v17 = vsub.f32 %v45_v5, %v53_v16 }
  0x85   :  { %v57_v18 = vmul.f32 %v501_v17, %v501_v17 }
  0x87   :  { %v59_v19 = vmul.f32 %v496_v12, %v57_v18 }
  0x89   :  { %62 = vadd.xlane.f32.xlu1 %v59_v19 }
  0xf4   :  { %v61_v27 = vpop.xlane.xlu1 %60 }
  0xf5   :  { %v64_v29 = vmul.f32 0.03125, %v61_v27 }
  0xf7   :  { %v66_v30 = vadd.f32 1e-05, %v64_v29 }
  0xf9   :  { %418 = vrsqrt.f32 %v66_v30  ;;  %vm74_vm2 = vweird.f32 %v66_v30 }
  0xfc   :  { %v63_v32 = vpop.xlane.xlu1 %62 }
  0xfd   :  { %v65_v33 = vmul.f32 0.03125, %v63_v32 }
  0xff   :  { %v419_v35 = vpop.eup %418  ;;  %v67_v36 = vadd.f32 1e-05, %v65_v33 }
 0x100   :  { %v69_v37 = vmul.f32 %v419_v35, %v66_v30  ;;  %vm75_vm1 = vweird.f32 %v419_v35 }
 0x101   :  { %420 = vrsqrt.f32 %v67_v36  ;;  %vm76_vm3 = vmor %vm74_vm2, %vm75_vm1  ;;  %vm84_vm5 = vweird.f32 %v67_v36 }
 0x102   :  { %v70_v39 = vmul.f32 %v419_v35, %v69_v37 }
 0x104   :  { %v71_v40 = vmul.f32 0.5, %v70_v39 }
 0x106   :  { %v72_v42 = vsub.f32 1.5, %v71_v40 }
 0x107   :  { %v421_v43 = vpop.eup %420 }
 0x108   :  { %v73_v44 = vmul.f32 %v419_v35, %v72_v42  ;;  %v79_v45 = vmul.f32 %v421_v43, %v67_v36  ;;  %vm85_vm4 = vweird.f32 %v421_v43 }
 0x109   :  { %vm86_vm6 = vmor %vm84_vm5, %vm85_vm4 }
 0x10a   :  { %v80_v46 = vmul.f32 %v421_v43, %v79_v45  ;;  %v77_v48 = vsel %vm76_vm3, %v419_v35, %v73_v44 }
 0x10b   :  { %v88_v50 = vmul.f32 %v77_v48, %v494_v10 }
 0x10c   :  { %v81_v47 = vmul.f32 0.5, %v80_v46 }
 0x10d   :  { %v93_v55 = vmul.f32 %v412_v51, %v88_v50 }
 0x10e   :  { %v82_v49 = vsub.f32 1.5, %v81_v47 }
 0x10f   :  { %v98_v58 = vadd.f32 %v413_v56, %v93_v55 }
 0x110   :  { %v83_v52 = vmul.f32 %v421_v43, %v82_v49 }
 0x112   :  { %v87_v53 = vsel %vm86_vm6, %v421_v43, %v83_v52  ;;  %v417_v43 = vld [vmem:[%s591_s9] ss:$0 sm:$0xff] }
 0x113   :  { %v89_v54 = vmul.f32 %v87_v53, %v501_v17 }
 0x115   :  { %v94_v57 = vmul.f32 %v412_v51, %v89_v54 }
 0x117   :  { %v99_v59 = vadd.f32 %v413_v56, %v94_v57 }
 0x119   :  { %v100_v60 = vpack.c.bf16 %v99_v59, %v98_v58 }
 0x11b   :  { %177 = vmatmul.bf16.vlgmr.msra.gmra.mxu0 %v100_v60 }
 0x198   :  { %v178_v1 = vpop.f32.mrf.mxu0 }
 0x199   :  { %v179_v3 = vadd.f32 %v414_v2, %v178_v1 }
 0x19b   :  { %v183_v6 = vmax.f32 %v179_v3, 0.0 }
 0x1a0   :  { %v180_v4 = vpop.f32.mrf.mxu0 }
 0x1a1   :  { %v181_v5 = vadd.f32 %v414_v2, %v180_v4 }
 0x1a3   :  { %v184_v7 = vmax.f32 %v181_v5, 0.0 }
 0x1a5   :  { %v185_v8 = vpack.c.bf16 %v184_v7, %v183_v6 }
 0x1a7   :  { %262 = vmatmul.bf16.vlgmr.msra.gmra.mxu1 %v185_v8 }
 0x224   :  { %v263_v10 = vpop.f32.mrf.mxu1 }
 0x225   :  { %v264_v11 = vadd.f32 %v415_v9, %v263_v10 }
 0x227   :  { %v268_v13 = vadd.f32 %v264_v11, %v98_v58 }
 0x229   :  { %272 = vadd.xlane.f32.xlu2 %v268_v13 }
 0x22c   :  { %v265_v14 = vpop.f32.mrf.mxu1 }
 0x22d   :  { %v266_v15 = vadd.f32 %v415_v9, %v265_v14 }
 0x22f   :  { %v269_v16 = vadd.f32 %v266_v15, %v99_v59 }
 0x231   :  { %274 = vadd.xlane.f32.xlu2 %v269_v16 }
 0x29c   :  { %v273_v17 = vpop.xlane.xlu2 %272 }
 0x29d   :  { %v276_v18 = vmul.f32 0.03125, %v273_v17 }
 0x29f   :  { %v278_v19 = vsub.f32 %v268_v13, %v276_v18 }
 0x2a1   :  { %v280_v20 = vmul.f32 %v278_v19, %v278_v19 }
 0x2a3   :  { %v282_v21 = vmul.f32 %v496_v12, %v280_v20 }
 0x2a4   :  { %v275_v22 = vpop.xlane.xlu2 %274 }
 0x2a5   :  { %v277_v23 = vmul.f32 0.03125, %v275_v22  ;;  %284 = vadd.xlane.f32.xlu0 %v282_v21 }
 0x2a7   :  { %v279_v24 = vsub.f32 %v269_v16, %v277_v23 }
 0x2a9   :  { %v281_v25 = vmul.f32 %v279_v24, %v279_v24 }
 0x2ab   :  { %v283_v26 = vmul.f32 %v496_v12, %v281_v25  ;;  %v416_v12 = vld [vmem:[%s590_s8] ss:$0 sm:$0xff] }
 0x2ad   :  { %286 = vadd.xlane.f32.xlu1 %v283_v26 }
 0x318   :  { %v285_v27 = vpop.xlane.xlu0 %284 }
 0x319   :  { %v288_v28 = vmul.f32 0.03125, %v285_v27 }
 0x31b   :  { %v290_v29 = vadd.f32 1e-05, %v288_v28 }
 0x31d   :  { %422 = vrsqrt.f32 %v290_v29  ;;  %vm298_vm8 = vweird.f32 %v290_v29 }
 0x320   :  { %v287_v30 = vpop.xlane.xlu1 %286 }
 0x321   :  { %v289_v31 = vmul.f32 0.03125, %v287_v30 }
 0x323   :  { %v423_v32 = vpop.eup %422  ;;  %v291_v33 = vadd.f32 1e-05, %v289_v31 }
 0x324   :  { %v293_v34 = vmul.f32 %v423_v32, %v290_v29  ;;  %vm299_vm7 = vweird.f32 %v423_v32 }
 0x325   :  { %424 = vrsqrt.f32 %v291_v33  ;;  %vm300_vm9 = vmor %vm298_vm8, %vm299_vm7  ;;  %vm308_vm11 = vweird.f32 %v291_v33 }
 0x326   :  { %v294_v35 = vmul.f32 %v423_v32, %v293_v34 }
 0x328   :  { %v295_v36 = vmul.f32 0.5, %v294_v35 }
 0x32a   :  { %v296_v37 = vsub.f32 1.5, %v295_v36 }
 0x32b   :  { %v425_v38 = vpop.eup %424 }
 0x32c   :  { %v297_v39 = vmul.f32 %v423_v32, %v296_v37  ;;  %v303_v40 = vmul.f32 %v425_v38, %v291_v33  ;;  %vm309_vm10 = vweird.f32 %v425_v38 }
 0x32d   :  { %vm310_vm12 = vmor %vm308_vm11, %vm309_vm10 }
 0x32e   :  { %v301_v41 = vsel %vm300_vm9, %v423_v32, %v297_v39  ;;  %v304_v42 = vmul.f32 %v425_v38, %v303_v40 }
 0x32f   :  { %v312_v44 = vmul.f32 %v301_v41, %v278_v19 }
 0x330   :  { %v305_v45 = vmul.f32 0.5, %v304_v42 }
 0x331   :  { %v317_v46 = vmul.f32 %v416_v12, %v312_v44 }
 0x332   :  { %v306_v47 = vsub.f32 1.5, %v305_v45 }
 0x333   :  { %v322_v48 = vadd.f32 %v417_v43, %v317_v46 }
 0x334   :  { %v307_v49 = vmul.f32 %v425_v38, %v306_v47 }
 0x335   :  { %324 = vst [vmem:[%s592_s10] sm:$0xff] %v322_v48 }
 0x336   :  { %v311_v50 = vsel %vm310_vm12, %v425_v38, %v307_v49 }
 0x337   :  { %v313_v51 = vmul.f32 %v311_v50, %v279_v24 }
 0x339   :  { %v318_v52 = vmul.f32 %v416_v12, %v313_v51 }
 0x33b   :  { %v323_v53 = vadd.f32 %v417_v43, %v318_v52 }
 0x33d   :  { %325 = vst [vmem:[%s592_s10 + $0x8] sm:$0xff] %v323_v53 }

</bundles_post_ra>
